<compile_context>
chip_gen: v7x
topology: tpu7x:2x2x1
jax: 0.10.0
libtpu: 0.0.40
codegen_flags: <defaults>
</compile_context>

<pallas_src>
import functools

import jax
import jax.numpy as jnp
from jax import lax
from jax.experimental import pallas as pl
from jax.experimental.pallas import tpu as pltpu

DW_K = 5       # kernel size of both depthwise convs
DW_PAD = 2     # padding of the plain depthwise conv
DWD_PAD = 6    # padding of the dilated depthwise conv
DWD_DIL = 3    # dilation of the dilated depthwise conv


def _attention_kernel(x_ref, wm1_ref, cpw_ref, m2_ref, b1_ref, b2_ref, o_ref, *, H):
    TH, WC = x_ref.shape                       # TH = images_per_block * H

    u = x_ref[...].astype(jnp.float32)         # (TH, WC) lane-dense activations

    rid = lax.broadcasted_iota(jnp.int32, (TH, 1), 0)
    if TH != H:
        rid = rid % H                          # row index within each image

    def conv_rows(src, mats_ref, dil, consts=None):
        # 5x5 depthwise conv (optionally pre-composed with the 1x1 pw conv):
        #   * the 5 column (kw) taps of each row tap are one block-banded
        #     (WC, WC) matmul on the lane axis (MXU); 'same' padding in W is
        #     encoded in the band structure built in the wrapper,
        #   * the 5 row (kh) taps are sublane rolls of the whole slab plus a
        #     per-image row-validity mask ('same' padding in H).  Rows that
        #     wrap across image boundaries are exactly the masked rows.
        acc = jnp.zeros((TH, WC), jnp.float32)
        for kh in range(DW_K):
            dh = (kh - 2) * dil
            xr = src if dh == 0 else pltpu.roll(src, (-dh) % TH, axis=0)
            t = jnp.dot(xr, mats_ref[kh].astype(jnp.float32),
                        preferred_element_type=jnp.float32)
            if consts is not None:
                t = t + consts[kh]             # pw-bias pushed through M_kh
            if dh > 0:
                t = jnp.where(rid < H - dh, t, 0.0)
            elif dh < 0:
                t = jnp.where(rid >= -dh, t, 0.0)
            acc = acc + t
        return acc

    # pointwise 1x1 conv is folded into the first depthwise conv (wm1 / cpw).
    a1 = conv_rows(u, wm1_ref, 1, cpw_ref[...].astype(jnp.float32))
    a1 = a1 + b1_ref[...].astype(jnp.float32)
    a2 = conv_rows(a1, m2_ref, DWD_DIL)
    a2 = a2 + b2_ref[...].astype(jnp.float32)

    o_ref[...] = (u * a2).astype(o_ref.dtype)  # gating: u * attention map


def attention_forward(x, wpw, bpw, wdw, bdw, wdwd, bdwd, *, images_per_block=1):
    """x: (N, H, W, C) NHWC. wpw: (Cin, Cout). bpw/bdw/bdwd: (1, C).
    wdw/wdwd: (5, 5, C)."""
    N, H, W, C = x.shape
    WC = W * C
    NB = images_per_block
    assert N % NB == 0, "N must be divisible by images_per_block"
    TH = NB * H
    f32 = jnp.float32

    # Lane-dense activation view: (N*H, W*C) -- pure metadata reshape.
    x2d = x.reshape(N * H, WC)

    # 1x1 pointwise conv as a block-diagonal (WC, WC) lane-mixing matrix.
    wblk = jnp.kron(jnp.eye(W, dtype=f32), wpw.astype(f32))           # (WC, WC)
    bpw_l = jnp.tile(bpw.astype(f32), (1, W))                         # (1, WC)

    def col_mats(wk, dil):
        # Per-kh block-banded column/channel mixing matrices (5, WC, WC):
        #   M[kh, w_in*C + c, w_out*C + c] = wk[kh, kw, c],
        #   with w_in = w_out + (kw - 2) * dil.
        # Out-of-range columns ('same' padding in W) simply have no band entry.
        eye_c = jnp.eye(C, dtype=f32)
        mats = []
        for kh in range(DW_K):
            m = jnp.zeros((W, C, W, C), f32)
            for kw in range(DW_K):
                dw = (kw - 2) * dil
                shift_eye = jnp.eye(W, W, k=-dw, dtype=f32)           # (w_in, w_out)
                chan = eye_c * wk[kh, kw].astype(f32)[None, :]        # (c_in, c_out)
                m = m + shift_eye[:, None, :, None] * chan[None, :, None, :]
            mats.append(m.reshape(WC, WC))
        return jnp.stack(mats, axis=0)                                # (5, WC, WC)

    m1 = col_mats(wdw, 1)
    m2 = col_mats(wdwd, DWD_DIL)

    # Fuse the pointwise conv into the first depthwise conv:
    #   y = x @ wblk + bpw   =>   per-kh term  x @ (wblk @ M1_kh) + bpw @ M1_kh
    wm1 = jnp.einsum('ab,kbc->kac', wblk, m1)                         # (5, WC, WC)
    cpw = jnp.einsum('ab,kbc->kac', bpw_l, m1)[:, 0, :]               # (5, WC)

    b1_l = jnp.tile(bdw.astype(f32), (1, W))                          # (1, WC)
    b2_l = jnp.tile(bdwd.astype(f32), (1, W))                         # (1, WC)

    kernel = functools.partial(_attention_kernel, H=H)

    out2d = pl.pallas_call(
        kernel,
        out_shape=jax.ShapeDtypeStruct((N * H, WC), x.dtype),
        grid_spec=pltpu.PrefetchScalarGridSpec(
            num_scalar_prefetch=0,
            grid=(N // NB,),
            in_specs=[
                pl.BlockSpec((TH, WC), lambda n: (n, 0)),             # activations
                pl.BlockSpec((DW_K, WC, WC), lambda n: (0, 0, 0)),    # pw+dw matrices
                pl.BlockSpec((DW_K, WC), lambda n: (0, 0)),           # pw bias thru M1
                pl.BlockSpec((DW_K, WC, WC), lambda n: (0, 0, 0)),    # dilated dw matrices
                pl.BlockSpec((1, WC), lambda n: (0, 0)),              # dw bias
                pl.BlockSpec((1, WC), lambda n: (0, 0)),              # dilated dw bias
            ],
            out_specs=pl.BlockSpec((TH, WC), lambda n: (n, 0)),
        ),
        compiler_params=pltpu.CompilerParams(
            dimension_semantics=("parallel",)),
    )(x2d, wm1, cpw, m2, b1_l, b2_l)

    return out2d.reshape(N, H, W, C)


def attention_reference(x, wpw, bpw, wdw, bdw, wdwd, bdwd):
    """Pure-JAX (XLA conv) reference for validation. NHWC."""
    dn = ('NHWC', 'HWIO', 'NHWC')
    C = x.shape[-1]
    u = x
    y = lax.conv_general_dilated(x, wpw[None, None, :, :], (1, 1), 'VALID',
                                 dimension_numbers=dn) + bpw[0]
    y = lax.conv_general_dilated(y, wdw[:, :, None, :], (1, 1),
                                 ((DW_PAD, DW_PAD), (DW_PAD, DW_PAD)),
                                 dimension_numbers=dn,
                                 feature_group_count=C) + bdw[0]
    y = lax.conv_general_dilated(y, wdwd[:, :, None, :], (1, 1),
                                 ((DWD_PAD, DWD_PAD), (DWD_PAD, DWD_PAD)),
                                 rhs_dilation=(DWD_DIL, DWD_DIL),
                                 dimension_numbers=dn,
                                 feature_group_count=C) + bdwd[0]
    return u * y


if __name__ == "__main__":
    N, H, W, C = 2, 16, 16, 8   # small NHWC problem (dim = 8, W*C = 128 lanes)

    key = jax.random.PRNGKey(0)
    kx, k1, k2, k3, k4, k5, k6 = jax.random.split(key, 7)

    x = jax.random.normal(kx, (N, H, W, C), dtype=jnp.float32)
    wpw = jax.random.normal(k1, (C, C), dtype=jnp.float32) * 0.1
    bpw = jax.random.normal(k2, (1, C), dtype=jnp.float32) * 0.1
    wdw = jax.random.normal(k3, (DW_K, DW_K, C), dtype=jnp.float32) * 0.1
    bdw = jax.random.normal(k4, (1, C), dtype=jnp.float32) * 0.1
    wdwd = jax.random.normal(k5, (DW_K, DW_K, C), dtype=jnp.float32) * 0.1
    bdwd = jax.random.normal(k6, (1, C), dtype=jnp.float32) * 0.1

    out = attention_forward(x, wpw, bpw, wdw, bdw, wdwd, bdwd)
    out = jax.block_until_ready(out)

    ref = attention_reference(x, wpw, bpw, wdw, bdw, wdwd, bdwd)
    ref = jax.block_until_ready(ref)

    assert out.shape == (N, H, W, C)
    assert jnp.allclose(out, ref, rtol=1e-4, atol=1e-4), \
        f"max abs err = {jnp.max(jnp.abs(out - ref))}"

    print("KERNEL_OK")
</pallas_src>

<mosaic_0001>
module attributes {stable_mosaic.version = 11 : i64} {
  func.func @_attention_kernel(%arg0: i32, %arg1: memref<16x128xf32, #tpu.memory_space<vmem>>, %arg2: memref<5x128x128xf32, #tpu.memory_space<vmem>>, %arg3: memref<5x128xf32, #tpu.memory_space<vmem>>, %arg4: memref<5x128x128xf32, #tpu.memory_space<vmem>>, %arg5: memref<1x128xf32, #tpu.memory_space<vmem>>, %arg6: memref<1x128xf32, #tpu.memory_space<vmem>>, %arg7: memref<16x128xf32, #tpu.memory_space<vmem>>) attributes {dimension_semantics = [#tpu.dimension_semantics<parallel>], iteration_bounds = array<i64: 2>, scalar_prefetch = 0 : i64, scratch_operands = 0 : i64, tpu.core_type = #tpu.core_type<tc>, window_params = [{transform_indices = @transform_0, window_bounds = array<i64: 16, 128>}, {pipeline_mode = #tpu.pipeline_mode<synchronous>, transform_indices = @transform_1, window_bounds = array<i64: 5, 128, 128>}, {pipeline_mode = #tpu.pipeline_mode<synchronous>, transform_indices = @transform_2, window_bounds = array<i64: 5, 128>}, {pipeline_mode = #tpu.pipeline_mode<synchronous>, transform_indices = @transform_3, window_bounds = array<i64: 5, 128, 128>}, {pipeline_mode = #tpu.pipeline_mode<synchronous>, transform_indices = @transform_4, window_bounds = array<i64: 1, 128>}, {pipeline_mode = #tpu.pipeline_mode<synchronous>, transform_indices = @transform_5, window_bounds = array<i64: 1, 128>}, {transform_indices = @transform_6, window_bounds = array<i64: 16, 128>}]} {
    %c0 = arith.constant 0 : index
    %c0_0 = arith.constant 0 : index
    %0 = vector.load %arg1[%c0, %c0_0] : memref<16x128xf32, #tpu.memory_space<vmem>>, vector<16x128xf32>
    %1 = tpu.iota {dimensions = array<i32: 0>} : vector<16x1xi32>
    %c0_1 = arith.constant 0 : index
    %c0_2 = arith.constant 0 : index
    %2 = vector.load %arg3[%c0_1, %c0_2] : memref<5x128xf32, #tpu.memory_space<vmem>>, vector<5x128xf32>
    %cst = arith.constant 0.000000e+00 : f32
    %3 = vector.broadcast %cst : f32 to vector<16x128xf32>
    %c2_i32 = arith.constant 2 : i32
    %4 = tpu.dynamic_rotate %0 by %c2_i32 dim 0 : vector<16x128xf32>, i32 -> vector<16x128xf32>
    %c0_3 = arith.constant 0 : index
    %c0_4 = arith.constant 0 : index
    %c0_5 = arith.constant 0 : index
    %5 = vector.load %arg2[%c0_3, %c0_4, %c0_5] : memref<5x128x128xf32, #tpu.memory_space<vmem>>, vector<1x128x128xf32>
    %6 = vector.shape_cast %5 : vector<1x128x128xf32> to vector<128x128xf32>
    %cst_6 = arith.constant dense<0.000000e+00> : vector<16x128xf32>
    %7 = tpu.matmul %4, %6, %cst_6 {dimension_numbers = #tpu.dot_dimension_numbers<[1], [0], [0], [1], [0, 0, 1, 1], [], []>} : vector<16x128xf32>, vector<128x128xf32>, vector<16x128xf32> -> vector<16x128xf32>
    %8 = vector.extract_strided_slice %2 {offsets = [0, 0], sizes = [1, 128], strides = [1, 1]} : vector<5x128xf32> to vector<1x128xf32>
    %9 = vector.shape_cast %8 : vector<1x128xf32> to vector<128xf32>
    %10 = vector.shape_cast %9 : vector<128xf32> to vector<1x128xf32>
    %11 = vector.broadcast %10 : vector<1x128xf32> to vector<16x128xf32>
    %12 = arith.addf %7, %11 : vector<16x128xf32>
    %c2_i32_7 = arith.constant 2 : i32
    %13 = vector.broadcast %c2_i32_7 : i32 to vector<16x1xi32>
    %14 = arith.cmpi sge, %1, %13 : vector<16x1xi32>
    %cst_8 = arith.constant 0.000000e+00 : f32
    %15 = vector.shape_cast %14 : vector<16x1xi1> to vector<16x1xi1>
    %16 = vector.broadcast %15 : vector<16x1xi1> to vector<16x128xi1>
    %17 = vector.broadcast %cst_8 : f32 to vector<16x128xf32>
    %18 = arith.select %16, %12, %17 : vector<16x128xi1>, vector<16x128xf32>
    %19 = arith.addf %3, %18 : vector<16x128xf32>
    %c1_i32 = arith.constant 1 : i32
    %20 = tpu.dynamic_rotate %0 by %c1_i32 dim 0 : vector<16x128xf32>, i32 -> vector<16x128xf32>
    %c1 = arith.constant 1 : index
    %c0_9 = arith.constant 0 : index
    %c0_10 = arith.constant 0 : index
    %21 = vector.load %arg2[%c1, %c0_9, %c0_10] : memref<5x128x128xf32, #tpu.memory_space<vmem>>, vector<1x128x128xf32>
    %22 = vector.shape_cast %21 : vector<1x128x128xf32> to vector<128x128xf32>
    %cst_11 = arith.constant dense<0.000000e+00> : vector<16x128xf32>
    %23 = tpu.matmul %20, %22, %cst_11 {dimension_numbers = #tpu.dot_dimension_numbers<[1], [0], [0], [1], [0, 0, 1, 1], [], []>} : vector<16x128xf32>, vector<128x128xf32>, vector<16x128xf32> -> vector<16x128xf32>
    %24 = vector.extract_strided_slice %2 {offsets = [1, 0], sizes = [1, 128], strides = [1, 1]} : vector<5x128xf32> to vector<1x128xf32>
    %25 = vector.shape_cast %24 : vector<1x128xf32> to vector<128xf32>
    %26 = vector.shape_cast %25 : vector<128xf32> to vector<1x128xf32>
    %27 = vector.broadcast %26 : vector<1x128xf32> to vector<16x128xf32>
    %28 = arith.addf %23, %27 : vector<16x128xf32>
    %c1_i32_12 = arith.constant 1 : i32
    %29 = vector.broadcast %c1_i32_12 : i32 to vector<16x1xi32>
    %30 = arith.cmpi sge, %1, %29 : vector<16x1xi32>
    %cst_13 = arith.constant 0.000000e+00 : f32
    %31 = vector.shape_cast %30 : vector<16x1xi1> to vector<16x1xi1>
    %32 = vector.broadcast %31 : vector<16x1xi1> to vector<16x128xi1>
    %33 = vector.broadcast %cst_13 : f32 to vector<16x128xf32>
    %34 = arith.select %32, %28, %33 : vector<16x128xi1>, vector<16x128xf32>
    %35 = arith.addf %19, %34 : vector<16x128xf32>
    %c2 = arith.constant 2 : index
    %c0_14 = arith.constant 0 : index
    %c0_15 = arith.constant 0 : index
    %36 = vector.load %arg2[%c2, %c0_14, %c0_15] : memref<5x128x128xf32, #tpu.memory_space<vmem>>, vector<1x128x128xf32>
    %37 = vector.shape_cast %36 : vector<1x128x128xf32> to vector<128x128xf32>
    %cst_16 = arith.constant dense<0.000000e+00> : vector<16x128xf32>
    %38 = tpu.matmul %0, %37, %cst_16 {dimension_numbers = #tpu.dot_dimension_numbers<[1], [0], [0], [1], [0, 0, 1, 1], [], []>} : vector<16x128xf32>, vector<128x128xf32>, vector<16x128xf32> -> vector<16x128xf32>
    %39 = vector.extract_strided_slice %2 {offsets = [2, 0], sizes = [1, 128], strides = [1, 1]} : vector<5x128xf32> to vector<1x128xf32>
    %40 = vector.shape_cast %39 : vector<1x128xf32> to vector<128xf32>
    %41 = vector.shape_cast %40 : vector<128xf32> to vector<1x128xf32>
    %42 = vector.broadcast %41 : vector<1x128xf32> to vector<16x128xf32>
    %43 = arith.addf %38, %42 : vector<16x128xf32>
    %44 = arith.addf %35, %43 : vector<16x128xf32>
    %c15_i32 = arith.constant 15 : i32
    %45 = tpu.dynamic_rotate %0 by %c15_i32 dim 0 : vector<16x128xf32>, i32 -> vector<16x128xf32>
    %c3 = arith.constant 3 : index
    %c0_17 = arith.constant 0 : index
    %c0_18 = arith.constant 0 : index
    %46 = vector.load %arg2[%c3, %c0_17, %c0_18] : memref<5x128x128xf32, #tpu.memory_space<vmem>>, vector<1x128x128xf32>
    %47 = vector.shape_cast %46 : vector<1x128x128xf32> to vector<128x128xf32>
    %cst_19 = arith.constant dense<0.000000e+00> : vector<16x128xf32>
    %48 = tpu.matmul %45, %47, %cst_19 {dimension_numbers = #tpu.dot_dimension_numbers<[1], [0], [0], [1], [0, 0, 1, 1], [], []>} : vector<16x128xf32>, vector<128x128xf32>, vector<16x128xf32> -> vector<16x128xf32>
    %49 = vector.extract_strided_slice %2 {offsets = [3, 0], sizes = [1, 128], strides = [1, 1]} : vector<5x128xf32> to vector<1x128xf32>
    %50 = vector.shape_cast %49 : vector<1x128xf32> to vector<128xf32>
    %51 = vector.shape_cast %50 : vector<128xf32> to vector<1x128xf32>
    %52 = vector.broadcast %51 : vector<1x128xf32> to vector<16x128xf32>
    %53 = arith.addf %48, %52 : vector<16x128xf32>
    %c15_i32_20 = arith.constant 15 : i32
    %54 = vector.broadcast %c15_i32_20 : i32 to vector<16x1xi32>
    %55 = arith.cmpi slt, %1, %54 : vector<16x1xi32>
    %cst_21 = arith.constant 0.000000e+00 : f32
    %56 = vector.shape_cast %55 : vector<16x1xi1> to vector<16x1xi1>
    %57 = vector.broadcast %56 : vector<16x1xi1> to vector<16x128xi1>
    %58 = vector.broadcast %cst_21 : f32 to vector<16x128xf32>
    %59 = arith.select %57, %53, %58 : vector<16x128xi1>, vector<16x128xf32>
    %60 = arith.addf %44, %59 : vector<16x128xf32>
    %c14_i32 = arith.constant 14 : i32
    %61 = tpu.dynamic_rotate %0 by %c14_i32 dim 0 : vector<16x128xf32>, i32 -> vector<16x128xf32>
    %c4 = arith.constant 4 : index
    %c0_22 = arith.constant 0 : index
    %c0_23 = arith.constant 0 : index
    %62 = vector.load %arg2[%c4, %c0_22, %c0_23] : memref<5x128x128xf32, #tpu.memory_space<vmem>>, vector<1x128x128xf32>
    %63 = vector.shape_cast %62 : vector<1x128x128xf32> to vector<128x128xf32>
    %cst_24 = arith.constant dense<0.000000e+00> : vector<16x128xf32>
    %64 = tpu.matmul %61, %63, %cst_24 {dimension_numbers = #tpu.dot_dimension_numbers<[1], [0], [0], [1], [0, 0, 1, 1], [], []>} : vector<16x128xf32>, vector<128x128xf32>, vector<16x128xf32> -> vector<16x128xf32>
    %65 = vector.extract_strided_slice %2 {offsets = [4, 0], sizes = [1, 128], strides = [1, 1]} : vector<5x128xf32> to vector<1x128xf32>
    %66 = vector.shape_cast %65 : vector<1x128xf32> to vector<128xf32>
    %67 = vector.shape_cast %66 : vector<128xf32> to vector<1x128xf32>
    %68 = vector.broadcast %67 : vector<1x128xf32> to vector<16x128xf32>
    %69 = arith.addf %64, %68 : vector<16x128xf32>
    %c14_i32_25 = arith.constant 14 : i32
    %70 = vector.broadcast %c14_i32_25 : i32 to vector<16x1xi32>
    %71 = arith.cmpi slt, %1, %70 : vector<16x1xi32>
    %cst_26 = arith.constant 0.000000e+00 : f32
    %72 = vector.shape_cast %71 : vector<16x1xi1> to vector<16x1xi1>
    %73 = vector.broadcast %72 : vector<16x1xi1> to vector<16x128xi1>
    %74 = vector.broadcast %cst_26 : f32 to vector<16x128xf32>
    %75 = arith.select %73, %69, %74 : vector<16x128xi1>, vector<16x128xf32>
    %76 = arith.addf %60, %75 : vector<16x128xf32>
    %c0_27 = arith.constant 0 : index
    %c0_28 = arith.constant 0 : index
    %77 = vector.load %arg5[%c0_27, %c0_28] : memref<1x128xf32, #tpu.memory_space<vmem>>, vector<1x128xf32>
    %78 = vector.broadcast %77 : vector<1x128xf32> to vector<16x128xf32>
    %79 = arith.addf %76, %78 : vector<16x128xf32>
    %cst_29 = arith.constant 0.000000e+00 : f32
    %80 = vector.broadcast %cst_29 : f32 to vector<16x128xf32>
    %c6_i32 = arith.constant 6 : i32
    %81 = tpu.dynamic_rotate %79 by %c6_i32 dim 0 : vector<16x128xf32>, i32 -> vector<16x128xf32>
    %c0_30 = arith.constant 0 : index
    %c0_31 = arith.constant 0 : index
    %c0_32 = arith.constant 0 : index
    %82 = vector.load %arg4[%c0_30, %c0_31, %c0_32] : memref<5x128x128xf32, #tpu.memory_space<vmem>>, vector<1x128x128xf32>
    %83 = vector.shape_cast %82 : vector<1x128x128xf32> to vector<128x128xf32>
    %cst_33 = arith.constant dense<0.000000e+00> : vector<16x128xf32>
    %84 = tpu.matmul %81, %83, %cst_33 {dimension_numbers = #tpu.dot_dimension_numbers<[1], [0], [0], [1], [0, 0, 1, 1], [], []>} : vector<16x128xf32>, vector<128x128xf32>, vector<16x128xf32> -> vector<16x128xf32>
    %c6_i32_34 = arith.constant 6 : i32
    %85 = vector.broadcast %c6_i32_34 : i32 to vector<16x1xi32>
    %86 = arith.cmpi sge, %1, %85 : vector<16x1xi32>
    %cst_35 = arith.constant 0.000000e+00 : f32
    %87 = vector.shape_cast %86 : vector<16x1xi1> to vector<16x1xi1>
    %88 = vector.broadcast %87 : vector<16x1xi1> to vector<16x128xi1>
    %89 = vector.broadcast %cst_35 : f32 to vector<16x128xf32>
    %90 = arith.select %88, %84, %89 : vector<16x128xi1>, vector<16x128xf32>
    %91 = arith.addf %80, %90 : vector<16x128xf32>
    %c3_i32 = arith.constant 3 : i32
    %92 = tpu.dynamic_rotate %79 by %c3_i32 dim 0 : vector<16x128xf32>, i32 -> vector<16x128xf32>
    %c1_36 = arith.constant 1 : index
    %c0_37 = arith.constant 0 : index
    %c0_38 = arith.constant 0 : index
    %93 = vector.load %arg4[%c1_36, %c0_37, %c0_38] : memref<5x128x128xf32, #tpu.memory_space<vmem>>, vector<1x128x128xf32>
    %94 = vector.shape_cast %93 : vector<1x128x128xf32> to vector<128x128xf32>
    %cst_39 = arith.constant dense<0.000000e+00> : vector<16x128xf32>
    %95 = tpu.matmul %92, %94, %cst_39 {dimension_numbers = #tpu.dot_dimension_numbers<[1], [0], [0], [1], [0, 0, 1, 1], [], []>} : vector<16x128xf32>, vector<128x128xf32>, vector<16x128xf32> -> vector<16x128xf32>
    %c3_i32_40 = arith.constant 3 : i32
    %96 = vector.broadcast %c3_i32_40 : i32 to vector<16x1xi32>
    %97 = arith.cmpi sge, %1, %96 : vector<16x1xi32>
    %cst_41 = arith.constant 0.000000e+00 : f32
    %98 = vector.shape_cast %97 : vector<16x1xi1> to vector<16x1xi1>
    %99 = vector.broadcast %98 : vector<16x1xi1> to vector<16x128xi1>
    %100 = vector.broadcast %cst_41 : f32 to vector<16x128xf32>
    %101 = arith.select %99, %95, %100 : vector<16x128xi1>, vector<16x128xf32>
    %102 = arith.addf %91, %101 : vector<16x128xf32>
    %c2_42 = arith.constant 2 : index
    %c0_43 = arith.constant 0 : index
    %c0_44 = arith.constant 0 : index
    %103 = vector.load %arg4[%c2_42, %c0_43, %c0_44] : memref<5x128x128xf32, #tpu.memory_space<vmem>>, vector<1x128x128xf32>
    %104 = vector.shape_cast %103 : vector<1x128x128xf32> to vector<128x128xf32>
    %cst_45 = arith.constant dense<0.000000e+00> : vector<16x128xf32>
    %105 = tpu.matmul %79, %104, %cst_45 {dimension_numbers = #tpu.dot_dimension_numbers<[1], [0], [0], [1], [0, 0, 1, 1], [], []>} : vector<16x128xf32>, vector<128x128xf32>, vector<16x128xf32> -> vector<16x128xf32>
    %106 = arith.addf %102, %105 : vector<16x128xf32>
    %c13_i32 = arith.constant 13 : i32
    %107 = tpu.dynamic_rotate %79 by %c13_i32 dim 0 : vector<16x128xf32>, i32 -> vector<16x128xf32>
    %c3_46 = arith.constant 3 : index
    %c0_47 = arith.constant 0 : index
    %c0_48 = arith.constant 0 : index
    %108 = vector.load %arg4[%c3_46, %c0_47, %c0_48] : memref<5x128x128xf32, #tpu.memory_space<vmem>>, vector<1x128x128xf32>
    %109 = vector.shape_cast %108 : vector<1x128x128xf32> to vector<128x128xf32>
    %cst_49 = arith.constant dense<0.000000e+00> : vector<16x128xf32>
    %110 = tpu.matmul %107, %109, %cst_49 {dimension_numbers = #tpu.dot_dimension_numbers<[1], [0], [0], [1], [0, 0, 1, 1], [], []>} : vector<16x128xf32>, vector<128x128xf32>, vector<16x128xf32> -> vector<16x128xf32>
    %c13_i32_50 = arith.constant 13 : i32
    %111 = vector.broadcast %c13_i32_50 : i32 to vector<16x1xi32>
    %112 = arith.cmpi slt, %1, %111 : vector<16x1xi32>
    %cst_51 = arith.constant 0.000000e+00 : f32
    %113 = vector.shape_cast %112 : vector<16x1xi1> to vector<16x1xi1>
    %114 = vector.broadcast %113 : vector<16x1xi1> to vector<16x128xi1>
    %115 = vector.broadcast %cst_51 : f32 to vector<16x128xf32>
    %116 = arith.select %114, %110, %115 : vector<16x128xi1>, vector<16x128xf32>
    %117 = arith.addf %106, %116 : vector<16x128xf32>
    %c10_i32 = arith.constant 10 : i32
    %118 = tpu.dynamic_rotate %79 by %c10_i32 dim 0 : vector<16x128xf32>, i32 -> vector<16x128xf32>
    %c4_52 = arith.constant 4 : index
    %c0_53 = arith.constant 0 : index
    %c0_54 = arith.constant 0 : index
    %119 = vector.load %arg4[%c4_52, %c0_53, %c0_54] : memref<5x128x128xf32, #tpu.memory_space<vmem>>, vector<1x128x128xf32>
    %120 = vector.shape_cast %119 : vector<1x128x128xf32> to vector<128x128xf32>
    %cst_55 = arith.constant dense<0.000000e+00> : vector<16x128xf32>
    %121 = tpu.matmul %118, %120, %cst_55 {dimension_numbers = #tpu.dot_dimension_numbers<[1], [0], [0], [1], [0, 0, 1, 1], [], []>} : vector<16x128xf32>, vector<128x128xf32>, vector<16x128xf32> -> vector<16x128xf32>
    %c10_i32_56 = arith.constant 10 : i32
    %122 = vector.broadcast %c10_i32_56 : i32 to vector<16x1xi32>
    %123 = arith.cmpi slt, %1, %122 : vector<16x1xi32>
    %cst_57 = arith.constant 0.000000e+00 : f32
    %124 = vector.shape_cast %123 : vector<16x1xi1> to vector<16x1xi1>
    %125 = vector.broadcast %124 : vector<16x1xi1> to vector<16x128xi1>
    %126 = vector.broadcast %cst_57 : f32 to vector<16x128xf32>
    %127 = arith.select %125, %121, %126 : vector<16x128xi1>, vector<16x128xf32>
    %128 = arith.addf %117, %127 : vector<16x128xf32>
    %c0_58 = arith.constant 0 : index
    %c0_59 = arith.constant 0 : index
    %129 = vector.load %arg6[%c0_58, %c0_59] : memref<1x128xf32, #tpu.memory_space<vmem>>, vector<1x128xf32>
    %130 = vector.broadcast %129 : vector<1x128xf32> to vector<16x128xf32>
    %131 = arith.addf %128, %130 : vector<16x128xf32>
    %132 = arith.mulf %0, %131 : vector<16x128xf32>
    %c0_60 = arith.constant 0 : index
    %c0_61 = arith.constant 0 : index
    %133 = vector.load %arg7[%c0_60, %c0_61] : memref<16x128xf32, #tpu.memory_space<vmem>>, vector<16x128xf32>
    tpu.vector_store %arg7[%c0_60, %c0_61], %132 {strides = array<i32>} : memref<16x128xf32, #tpu.memory_space<vmem>>, vector<16x128xf32>,
    return
  }
  func.func @transform_0(%arg0: i32) -> (i32, i32) {
    %c0_i32 = arith.constant 0 : i32
    %c0_i32_0 = arith.constant 0 : i32
    return %arg0, %c0_i32 : i32, i32
  }
  func.func @transform_1(%arg0: i32) -> (i32, i32, i32) {
    %c0_i32 = arith.constant 0 : i32
    %c0_i32_0 = arith.constant 0 : i32
    %c0_i32_1 = arith.constant 0 : i32
    %c0_i32_2 = arith.constant 0 : i32
    return %c0_i32, %c0_i32_0, %c0_i32_1 : i32, i32, i32
  }
  func.func @transform_2(%arg0: i32) -> (i32, i32) {
    %c0_i32 = arith.constant 0 : i32
    %c0_i32_0 = arith.constant 0 : i32
    %c0_i32_1 = arith.constant 0 : i32
    return %c0_i32, %c0_i32_0 : i32, i32
  }
  func.func @transform_3(%arg0: i32) -> (i32, i32, i32) {
    %c0_i32 = arith.constant 0 : i32
    %c0_i32_0 = arith.constant 0 : i32
    %c0_i32_1 = arith.constant 0 : i32
    %c0_i32_2 = arith.constant 0 : i32
    return %c0_i32, %c0_i32_0, %c0_i32_1 : i32, i32, i32
  }
  func.func @transform_4(%arg0: i32) -> (i32, i32) {
    %c0_i32 = arith.constant 0 : i32
    %c0_i32_0 = arith.constant 0 : i32
    %c0_i32_1 = arith.constant 0 : i32
    return %c0_i32, %c0_i32_0 : i32, i32
  }
  func.func @transform_5(%arg0: i32) -> (i32, i32) {
    %c0_i32 = arith.constant 0 : i32
    %c0_i32_0 = arith.constant 0 : i32
    %c0_i32_1 = arith.constant 0 : i32
    return %c0_i32, %c0_i32_0 : i32, i32
  }
  func.func @transform_6(%arg0: i32) -> (i32, i32) {
    %c0_i32 = arith.constant 0 : i32
    %c0_i32_0 = arith.constant 0 : i32
    return %arg0, %c0_i32 : i32, i32
  }
}

</mosaic_0001>

<bundles_post_ra>
// kernel: tpu_custom_call.1
= control target key start
LH: loop header
LB: loop body
LE: loop exit
PB: predicated region body
PF: predicated region fallthrough
CT: control target
= control target key end

     0   :  { %11 = vsyncpa [#allocation3], 0  ;;  %s3093_s0 = inlined_call_operand.hbm [shape: f32[32,128], index: 0, kind: input, shape index: {}]   ;;  %s3094_s1 = inlined_call_operand.hbm [shape: f32[5,128,128], index: 1, kind: input, shape index: {}]   ;;  %s3095_s2 = inlined_call_operand.hbm [shape: f32[5,128], index: 2, kind: input, shape index: {}]   ;;  %s3096_s3 = inlined_call_operand.hbm [shape: f32[5,128,128], index: 3, kind: input, shape index: {}]   ;;  %s3097_s4 = inlined_call_operand.vmem [shape: f32[1,128], index: 4, kind: input, shape index: {}]   ;;  %s3098_s5 = inlined_call_operand.vmem [shape: f32[1,128], index: 5, kind: input, shape index: {}]   ;;  %s3099_s6 = inlined_call_operand.hbm [shape: f32[32,128], index: 6, kind: output, shape index: {}]  }
   0x1   :  { %13 = vsyncpa [#allocation3 + $0x1], 0 }
   0x2   :  { %14 = vsyncpa [#allocation6], 0 }
   0x3   :  { %15 = vsyncpa [#allocation9], 0 }
   0x4   :  { %16 = vsyncpa [#allocation4], 0 }
   0x5   :  { %18 = vsyncpa [#allocation4 + $0x1], 0  ;;  %s2707_s21 = smov 0   ;;  %s2709_s22 = smov 0  }
   0x6   :  { %s2711_s23 = smov 0   ;;  %s2713_s24 = smov 0  }
   0x7 LB: > { %s2728_s25 = sadd.s32 4294967295, %s2661_s24   ;;  %s1518_s26 = sadd.s32 4294967294, %s2661_s24   ;;  %s2661_s24 = sphi %s2713_s24, %s3122_s24   ;;  %s2657_s23 = sphi %s2711_s23, %s3121_s23   ;;  %s2653_s22 = sphi %s2709_s22, %s3120_s22   ;;  %s2649_s21 = sphi %s2707_s21, %s3119_s21  }
   0x8   : > { %p44_p0 = scmp.ne.s32.totalorder %s2653_s22, %s2649_s21  ;;  %p3100_p1 = scmp.eq.s32.totalorder %s2728_s25, 0 }
   0x9   : > { %p179_p3 = scmp.eq.s32.totalorder %s1518_s26, 1  ;;  %p1519_p5 = scmp.ge.s32.totalorder %s2661_s24, 1 }
   0xa   : > { %p2737_p4 = por %p3100_p1, %p44_p0  ;;  %p186_p7 = scmp.lt.s32.totalorder %s2661_s24, 3 }
   0xb   : > { %p2742_p6 = por %p179_p3, %p44_p0  ;;  %s2663_s30 = smov [#allocation5]  }
   0xc   : > { %s3103_s27 = scalar_select %p2737_p4, 1, 0 }
   0xd   : > { %s3104_s28 = scalar_select %p2742_p6, 1, 0 }
   0xe   : > { %p2747_p8 = pnand %p1519_p5, %p186_p7  ;;  %s198_s7 = sshll.u32 %s2663_s30, 4  ;;  %s2751_s7 = int_to_ptr.vmem [resolvable:$true] %s198_s7 }
   0xf   : > { %s2664_s9 = smov [#allocation7]   ;;  %s2665_s11 = smov [#allocation8]  }
  0x10   : > { %s3105_s29 = scalar_select %p2747_p8, 1, 0 }
  0x11   : > { %p2408_p9 = pneg %p2747_p8  ;;  %s212_s10 = sshll.u32 %s2664_s9, 4  ;;  %s2762_s10 = int_to_ptr.vmem [resolvable:$true] %s212_s10 }
  0x12   : > { %s2764_s12 = sshll.u32 %s2665_s11, 4  ;;  %s2473_s15 = scalar_lea.hbm %s3094_s1, 10240  ;;  %s223_s12 = int_to_ptr.vmem [resolvable:$true] %s2764_s12 }
  0x13   : > { %p2758_p11 = pnand %p2408_p9, %p3100_p1  ;;  %p2474_p12 = scmp.ne.s32.totalorder %s3094_s1, %s2473_s15 }
  0x14   : > { %p2480_p5 = scmp.lt.u32.totalorder %s2473_s15, %s3094_s1 }
  0x15   : > { %p2774_p13 = pneg %p2758_p11 }
  0x17   : > { %p2476_p0 = pnand %p2774_p13, %p2474_p12 }
  0x19   : > { %p2477_p3 = pneg %p2476_p0 }
  0x1b   : > { %p2482_p7 = pnand %p2480_p5, %p2477_p3 }
  0x1d   : > { %2485 = shalt.err (!%p2482_p7)
}
  0x1e   : > { %s2486_s26 = scalar_lea.vmem %s2751_s7, 10240  ;;  %p2494_p2 = scmp.lt.s32.totalorder %s2751_s7, %s2751_s7 }
  0x1f   : > { %p2487_p9 = scmp.ne.s32.totalorder %s2751_s7, %s2486_s26  ;;  %p2495_p6 = scmp.lt.s32.totalorder %s2486_s26, %s2486_s26 }
  0x21   : > { %p2489_p10 = pnand %p2487_p9, %p2774_p13  ;;  %p2496_p12 = por %p2495_p6, %p2494_p2 }
  0x23   : > { %p2490_p1 = pneg %p2489_p10 }
  0x25   : > { %p2497_p0 = pnand %p2496_p12, %p2490_p1 }
  0x27   : > { %2500 = shalt.err (!%p2497_p0)
}
  0x28   : > { %s2666_s30 = smov 128   ;;  %s2667_s9 = smov 8  }
  0x29   : > { %2411 = dma.hbm_to_vmem [thread:$0]  (!%p2758_p11), %s3094_s1, 10240, %s2751_s7, [#allocation6], %s2666_s30, %s2666_s30, %s2667_s9  }
  0x2a   : > { %s2501_s16 = scalar_lea.hbm %s3095_s2, 128 }
  0x2b   : > { %p2502_p1 = scmp.ne.s32.totalorder %s3095_s2, %s2501_s16  ;;  %p2508_p10 = scmp.lt.u32.totalorder %s2501_s16, %s3095_s2 }
  0x2d   : > { %p2504_p2 = pnand %p2502_p1, %p2774_p13 }
  0x2f   : > { %p2505_p6 = pneg %p2504_p2 }
  0x31   : > { %p2510_p3 = pnand %p2508_p10, %p2505_p6 }
  0x33   : > { %2513 = shalt.err (!%p2510_p3)
}
  0x34   : > { %s2514_s7 = scalar_lea.vmem %s2762_s10, 128  ;;  %p2522_p12 = scmp.lt.s32.totalorder %s2762_s10, %s2762_s10 }
  0x35   : > { %p2515_p5 = scmp.ne.s32.totalorder %s2762_s10, %s2514_s7  ;;  %p2523_p0 = scmp.lt.s32.totalorder %s2514_s7, %s2514_s7 }
  0x37   : > { %p2517_p7 = pnand %p2515_p5, %p2774_p13  ;;  %p2524_p1 = por %p2523_p0, %p2522_p12 }
  0x39   : > { %p2518_p9 = pneg %p2517_p7 }
  0x3b   : > { %p2525_p2 = pnand %p2524_p1, %p2518_p9 }
  0x3d   : > { %2528 = shalt.err (!%p2525_p2)
}
  0x3e   : > { %2414 = dma.hbm_to_vmem [thread:$0]  (!%p2758_p11), %s3095_s2, 128, %s2762_s10, [#allocation6]  }
  0x3f   : > { %s2529_s16 = scalar_lea.hbm %s3096_s3, 10240 }
  0x40   : > { %p2530_p6 = scmp.ne.s32.totalorder %s3096_s3, %s2529_s16  ;;  %p2536_p5 = scmp.lt.u32.totalorder %s2529_s16, %s3096_s3 }
  0x42   : > { %p2532_p10 = pnand %p2530_p6, %p2774_p13 }
  0x44   : > { %p2533_p3 = pneg %p2532_p10 }
  0x46   : > { %p2538_p7 = pnand %p2536_p5, %p2533_p3 }
  0x48   : > { %2541 = shalt.err (!%p2538_p7)
}
  0x49   : > { %s2542_s7 = scalar_lea.vmem %s223_s12, 10240  ;;  %p2550_p1 = scmp.lt.s32.totalorder %s223_s12, %s223_s12 }
  0x4a   : > { %p2543_p9 = scmp.ne.s32.totalorder %s223_s12, %s2542_s7  ;;  %p2551_p2 = scmp.lt.s32.totalorder %s2542_s7, %s2542_s7 }
  0x4c   : > { %p2545_p12 = pnand %p2543_p9, %p2774_p13  ;;  %p2552_p4 = por %p2551_p2, %p2550_p1 }
  0x4e   : > { %p2546_p0 = pneg %p2545_p12 }
  0x50   : > { %p2553_p8 = pnand %p2552_p4, %p2546_p0 }
  0x52   : > { %2556 = shalt.err (!%p2553_p8)
}
  0x53   : > { %2417 = dma.hbm_to_vmem [thread:$0]  (!%p2758_p11), %s3096_s3, 10240, %s223_s12, [#allocation9], %s2666_s30, %s2666_s30, %s2667_s9  }
  0x54   : > { %s2844_s18 = sadd.s32 1, %s2661_s24   ;;  %s31_s13 = sadd.s32 1, %s2657_s23 }
  0x55   : > { %s28_s8 = ssub.s32 %s2661_s24, %s2844_s18  ;;  %p38_p8 = scmp.ne.s32.totalorder %s2657_s23, %s2653_s22 }
  0x56   : > { %p29_p4 = scmp.eq.s32.totalorder %s28_s8, 0  ;;  %p39_p13 = scmp.eq.s32.totalorder %s2661_s24, 0 }
  0x57   : > { %p2429_p6 = scmp.lt.s32.totalorder %s2661_s24, 2  ;;  %p3108_p3 = scmp.eq.s32.totalorder %s2728_s25, 1 }
  0x58   : > { %s2854_s14 = scalar_select %p29_p4, %s2657_s23, %s31_s13  }
  0x59   : > { %p40_p10 = por %p39_p13, %p38_p8  ;;  %p2858_p5 = por %p3108_p3, %p38_p8 }
  0x5a   : > { %s242_s16 = sand.u32 1, %s2657_s23   ;;  %s1540_s17 = sshll.u32 %s2661_s24, 8 }
  0x5b   : > { %s1524_s12 = sshll.u32 %s242_s16, 4  ;;  %s2867_s26 = scalar_lea.hbm %s3093_s0, %s1540_s17 }
  0x5c   : > { %s246_s7 = scalar_lea.vmem [#allocation2], %s1524_s12  ;;  %p2869_p11 = pnand %p2429_p6, %p40_p10 }
  0x5d   : > { %s253_s10 = sshll.u32 %s246_s7, 4  ;;  %s2875_s8 = scalar_lea.sflag [#allocation3], %s242_s16  ;;  %s2873_s10 = int_to_ptr.vmem [resolvable:$true] %s253_s10 }
  0x5e   : > { %s2557_s13 = scalar_lea.hbm %s2867_s26, 256  ;;  %p2559_p9 = pneg %p2869_p11 }
  0x5f   : > { %p2558_p7 = scmp.ne.s32.totalorder %s2867_s26, %s2557_s13  ;;  %s2562_s19 = scalar_lea.hbm %s3093_s0, 512 }
  0x60   : > { %p2563_p1 = scmp.lt.u32.totalorder %s2867_s26, %s3093_s0  ;;  %p2564_p2 = scmp.lt.u32.totalorder %s2562_s19, %s2557_s13 }
  0x61   : > { %p2560_p12 = pnand %p2559_p9, %p2558_p7  ;;  %p2566_p8 = scmp.lt.u32.totalorder %s2557_s13, %s2867_s26 }
  0x62   : > { %p2565_p4 = por %p2564_p2, %p2563_p1 }
  0x63   : > { %p2561_p0 = pneg %p2560_p12 }
  0x64   : > { %p2567_p13 = por %p2566_p8, %p2565_p4 }
  0x66   : > { %p2568_p6 = pnand %p2567_p13, %p2561_p0 }
  0x68   : > { %2571 = shalt.err (!%p2568_p6)
}
  0x69   : > { %s2572_s16 = scalar_lea.vmem %s2873_s10, 256  ;;  %s2668_s17 = smov [#allocation2]  }
  0x6a   : > { %p2573_p10 = scmp.ne.s32.totalorder %s2873_s10, %s2572_s16  ;;  %s2577_s12 = sshll.u32 %s2668_s17, 4  ;;  %s2578_s12 = int_to_ptr.vmem [resolvable:$false] %s2577_s12 }
  0x6b   : > { %s2579_s20 = scalar_lea.vmem %s2578_s12, 512  ;;  %p2580_p12 = scmp.lt.s32.totalorder %s2873_s10, %s2578_s12 }
  0x6c   : > { %p2575_p3 = pnand %p2573_p10, %p2559_p9  ;;  %p2581_p1 = scmp.lt.s32.totalorder %s2579_s20, %s2572_s16 }
  0x6e   : > { %p2576_p7 = pneg %p2575_p3  ;;  %p2582_p2 = por %p2581_p1, %p2580_p12 }
  0x70   : > { %p2583_p4 = pnand %p2582_p2, %p2576_p7 }
  0x72   : > { %2586 = shalt.err (!%p2583_p4)
}
  0x73   : > { %2421 = dma.hbm_to_vmem [thread:$0]  (!%p2869_p11), %s2867_s26, 256, %s2873_s10, %s2875_s8, %s2666_s30, %s2666_s30, %s2667_s9  }
  0x74   : > { %p3111_p9 = scmp.ne.s32.totalorder %s3105_s29, 0 }
  0x75   : > { %s2909_s13 = sand.u32 (!%p3111_p9), 1, %s2653_s22   ;;  %p3112_p0 = scmp.ne.s32.totalorder (!%p3111_p9), %s3103_s27, 0 }
  0x76   : > { %265 = sbr.rel (%p3111_p9) target bundleno = 753 (0x2f1), region = 44  ;;  %s1528_s19 = sshll.u32 (!%p3111_p9), %s2909_s13, 4 }
  0x77   : > { %s268_s7 = scalar_lea.sflag (!%p3111_p9), [#allocation3], %s2909_s13  ;;  %s2915_s11 = scalar_lea.vmem (!%p3111_p9), [#allocation2], %s1528_s19 }
  0x7d   : > { %2632 = dma.done.wait (%p3112_p0), %s268_s7, 256  }
  0x7e   : > { %2634 = vsyncadd (%p3112_p0), %s268_s7, 4294967040  ;;  %p3113_p11 = scmp.eq.s32.totalorder %s2728_s25, 0 }
  0x80   : > { %2636 = dma.done.wait (%p3113_p11), [#allocation6], 10368   ;;  %p3114_p8 = pmov %p3113_p11 }
  0x82   : > { %2638 = vsyncadd (%p3114_p8), [#allocation6], 4294956928  ;;  %p3115_p13 = pmov %p3114_p8 }
  0x83   : > { %p3116_p6 = pmov %p3114_p8 }
  0x84   : > { %2640 = dma.done.wait (%p3115_p13), [#allocation9], 10240  }
  0x85   : > { %2642 = vsyncadd (%p3116_p6), [#allocation9], 4294957056  ;;  %v325_v0 = vld [vmem:[#allocation5] sm:$0xff]  ;;  %v326_v1 = vld [vmem:[#allocation5 + $0x8] sm:$0xff]  ;;  %v316_v12 = vlaneseq  ;;  %s311_s26 = scalar_lea.vmem [#allocation10], %s1528_s19  ;;  %s1541_s8 = sshll.u32 %s2728_s25, 8 }
  0x86   : > { %v436_v2 = vld [vmem:[#allocation5 + $0x80] sm:$0xff]  ;;  %v2072_v3 = vpack.c.bf16 %v326_v1, %v325_v0  ;;  %v437_v4 = vld [vmem:[#allocation5 + $0x88] sm:$0xff]  ;;  %v327_v5 = vld [vmem:[#allocation5 + $0x10] sm:$0xff]  ;;  %s1416_s10 = sshll.u32 %s311_s26, 4  ;;  %s3047_s12 = scalar_lea.hbm %s3099_s6, %s1541_s8  ;;  %s3042_s10 = int_to_ptr.vmem [resolvable:$true] %s1416_s10 }
  0x87   : > { %v328_v6 = vld [vmem:[#allocation5 + $0x18] sm:$0xff]  ;;  %v2104_v7 = vpack.c.bf16 %v437_v4, %v436_v2  ;;  %v438_v9 = vld [vmem:[#allocation5 + $0x90] sm:$0xff]  ;;  %v329_v11 = vld [vmem:[#allocation5 + $0x20] sm:$0xff]  ;;  %v2929_v21 = vshrl.u32 %v316_v12, 7  ;;  %s1403_s20 = scalar_lea.sflag [#allocation4], %s2909_s13  ;;  %s2587_s25 = scalar_lea.vmem %s3042_s10, 256 }
  0x88   : > { %v2076_v8 = vpack.c.bf16 %v328_v6, %v327_v5  ;;  %v439_v10 = vld [vmem:[#allocation5 + $0x98] sm:$0xff]  ;;  %2073 = vmatprep.subr.bf16.mxu0 %v2072_v3  ;;  %v330_v14 = vld [vmem:[#allocation5 + $0x28] sm:$0xff]  ;;  %v440_v15 = vld [vmem:[#allocation5 + $0xa0] sm:$0xff]  ;;  %p2588_p10 = scmp.ne.s32.totalorder %s3042_s10, %s2587_s25  ;;  %s2669_s19 = smov [#allocation10]  }
  0x89   : > { %v2108_v13 = vpack.c.bf16 %v439_v10, %v438_v9  ;;  %v441_v16 = vld [vmem:[#allocation5 + $0xa8] sm:$0xff]  ;;  %2105 = vmatprep.subr.bf16.mxu1 %v2104_v7  ;;  %2075 = vmatpush3.bf16.msra.mxu0 %v2072_v3  ;;  %v2080_v17 = vpack.c.bf16 %v330_v14, %v329_v11  ;;  %v331_v19 = vld [vmem:[#allocation5 + $0x30] sm:$0xff]  ;;  %v332_v20 = vld [vmem:[#allocation5 + $0x38] sm:$0xff]  ;;  %vm322_vm0 = vcmp.lt.s32.totalorder %v2929_v21, 2  ;;  %vm432_vm1 = vcmp.lt.s32.totalorder %v2929_v21, 1  ;;  %s2591_s7 = sshll.u32 %s2669_s19, 4  ;;  %s2592_s7 = int_to_ptr.vmem [resolvable:$false] %s2591_s7 }
  0x8a   : > { %2107 = vmatpush3.bf16.msra.mxu1 %v2104_v7  ;;  %2077 = vmatprep.subr.bf16.mxu0 %v2076_v8  ;;  %v2112_v18 = vpack.c.bf16 %v441_v16, %v440_v15  ;;  %v442_v22 = vld [vmem:[#allocation5 + $0xb0] sm:$0xff]  ;;  %v443_v23 = vld [vmem:[#allocation5 + $0xb8] sm:$0xff]  ;;  %v2084_v24 = vpack.c.bf16 %v332_v20, %v331_v19  ;;  %v333_v26 = vld [vmem:[#allocation5 + $0x40] sm:$0xff]  ;;  %vm641_vm2 = vcmp.lt.s32.totalorder %v2929_v21, 7  ;;  %vm752_vm3 = vcmp.lt.s32.totalorder %v2929_v21, 6  ;;  %p2589_p3 = pnand %p2588_p10, %p2858_p5  ;;  %p2594_p12 = scmp.lt.s32.totalorder %s3042_s10, %s2592_s7 }
  0x8b   : > { %2109 = vmatprep.subr.bf16.mxu1 %v2108_v13  ;;  %v2116_v25 = vpack.c.bf16 %v443_v23, %v442_v22  ;;  %v334_v27 = vld [vmem:[#allocation5 + $0x48] sm:$0xff]  ;;  %v2932_v28 = vld [vmem:[%s2915_s11] sm:$0xff]  ;;  %v336_v39 = vld [vmem:[#allocation5 + $0x58] sm:$0xff]  ;;  %vm420_vm4 = vcmp.ge.s32.totalorder %v2929_v21, 2  ;;  %vm531_vm5 = vcmp.ge.s32.totalorder %v2929_v21, 1  ;;  %vm977_vm8 = vcmp.lt.s32.totalorder %v2929_v21, 3 }
  0x8c   : > { %v444_v29 = vld [vmem:[#allocation5 + $0xc0] sm:$0xff]  ;;  %v445_v30 = vld [vmem:[#allocation5 + $0xc8] sm:$0xff]  ;;  %v320_v32 = vrot.slane %v2932_v28, 6  ;;  %v430_v33 = vrot.slane %v2932_v28, 7  ;;  %v2088_v36 = vpack.c.bf16 %v334_v27, %v333_v26  ;;  %v335_v38 = vld [vmem:[#allocation5 + $0x50] sm:$0xff]  ;;  %v639_v5 = vrot.slane %v2932_v28, 1  ;;  %p2590_p7 = pneg %p2589_p3 }
  0x8d   : > { %2079 = vmatpush3.bf16.msra.mxu0 %v2076_v8  ;;  %v2936_v31 = vld [vmem:[%s2915_s11 + $0x8] sm:$0xff]  ;;  %v2120_v37 = vpack.c.bf16 %v445_v30, %v444_v29  ;;  %v446_v42 = vld [vmem:[#allocation5 + $0xd0] sm:$0xff]  ;;  %v2092_v44 = vpack.c.bf16 %v336_v39, %v335_v38  ;;  %v337_v46 = vld [vmem:[#allocation5 + $0x60] sm:$0xff]  ;;  %vm1178_vm9 = vcmp.lt.s32.totalorder %v2929_v21, 5  ;;  %vm965_vm10 = vcmp.ge.s32.totalorder %v2929_v21, 6  ;;  %s2593_s11 = scalar_lea.vmem %s2592_s7, 512 }
  0x8e   : > { %2111 = vmatpush3.bf16.msra.mxu1 %v2108_v13  ;;  %2081 = vmatprep.subr.bf16.mxu0 %v2080_v17  ;;  %v321_v34 = vrot.slane %v2936_v31, 6  ;;  %v431_v35 = vrot.slane %v2936_v31, 7  ;;  %v447_v43 = vld [vmem:[#allocation5 + $0xd8] sm:$0xff]  ;;  %v338_v47 = vld [vmem:[#allocation5 + $0x68] sm:$0xff]  ;;  %v448_v48 = vld [vmem:[#allocation5 + $0xe0] sm:$0xff]  ;;  %v640_v6 = vrot.slane %v2936_v31, 1  ;;  %p2595_p1 = scmp.lt.s32.totalorder %s2593_s11, %s2587_s25 }
  0x8f   : > { %2113 = vmatprep.subr.bf16.mxu1 %v2112_v18  ;;  %v2124_v45 = vpack.c.bf16 %v447_v43, %v446_v42  ;;  %v449_v49 = vld [vmem:[#allocation5 + $0xe8] sm:$0xff]  ;;  %v2096_v50 = vpack.c.bf16 %v338_v47, %v337_v46  ;;  %v339_v52 = vld [vmem:[#allocation5 + $0x70] sm:$0xff]  ;;  %v340_v53 = vld [vmem:[#allocation5 + $0x78] sm:$0xff]  ;;  %vm1072_vm11 = vcmp.ge.s32.totalorder %v2929_v21, 3 }
  0x90   : > { %v324_v40 = vsel %vm322_vm0, %v321_v34, %v320_v32  ;;  %v434_v41 = vsel %vm432_vm1, %v431_v35, %v430_v33  ;;  %v2128_v51 = vpack.c.bf16 %v449_v49, %v448_v48  ;;  %v450_v54 = vld [vmem:[#allocation5 + $0xf0] sm:$0xff]  ;;  %v451_v55 = vld [vmem:[#allocation5 + $0xf8] sm:$0xff]  ;;  %v2100_v56 = vpack.c.bf16 %v340_v53, %v339_v52  ;;  %v542_v58 = vld [vmem:[#allocation5 + $0x100] sm:$0xff]  ;;  %p2596_p2 = por %p2595_p1, %p2594_p12 }
  0x91   : > { %2083 = vmatpush3.bf16.msra.mxu0 %v2080_v17  ;;  %1754 = vmatprep.mubr.f32.mxu0 %v324_v40  ;;  %v2132_v57 = vpack.c.bf16 %v451_v55, %v450_v54  ;;  %v543_v59 = vld [vmem:[#allocation5 + $0x108] sm:$0xff]  ;;  %v645_v60 = vld [vmem:[#allocation5 + $0x180] sm:$0xff]  ;;  %v544_v0 = vld [vmem:[#allocation5 + $0x110] sm:$0xff]  ;;  %v323_v4 = vsel %vm322_vm0, %v320_v32, %v321_v34  ;;  %v433_v7 = vsel %vm432_vm1, %v430_v33, %v431_v35  ;;  %v750_v55 = vrot.slane %v2932_v28, 2 }
  0x92   : > { %2115 = vmatpush3.bf16.msra.mxu1 %v2112_v18  ;;  %2085 = vmatprep.subr.bf16.mxu0 %v2084_v24  ;;  %v646_v61 = vld [vmem:[#allocation5 + $0x188] sm:$0xff]  ;;  %v2136_v62 = vpack.c.bf16 %v543_v59, %v542_v58  ;;  %v545_v1 = vld [vmem:[#allocation5 + $0x118] sm:$0xff]  ;;  %v647_v2 = vld [vmem:[#allocation5 + $0x190] sm:$0xff]  ;;  %v642_v14 = vsel %vm641_vm2, %v639_v5, %v640_v6  ;;  %p2597_p4 = pnand %p2596_p2, %p2590_p7 }
  0x93   : > { %2117 = vmatprep.subr.bf16.mxu1 %v2116_v25  ;;  %1789 = vmatprep.mubr.f32.mxu1 %v434_v41  ;;  %v2168_v63 = vpack.c.bf16 %v646_v61, %v645_v60  ;;  %v648_v3 = vld [vmem:[#allocation5 + $0x198] sm:$0xff]  ;;  %v2140_v8 = vpack.c.bf16 %v545_v1, %v544_v0  ;;  %v546_v10 = vld [vmem:[#allocation5 + $0x120] sm:$0xff]  ;;  %v547_v11 = vld [vmem:[#allocation5 + $0x128] sm:$0xff] }
  0x94   : > { %v2172_v9 = vpack.c.bf16 %v648_v3, %v647_v2  ;;  %v649_v12 = vld [vmem:[#allocation5 + $0x1a0] sm:$0xff]  ;;  %v650_v13 = vld [vmem:[#allocation5 + $0x1a8] sm:$0xff]  ;;  %v2144_v15 = vpack.c.bf16 %v547_v11, %v546_v10  ;;  %v548_v17 = vld [vmem:[#allocation5 + $0x130] sm:$0xff] }
  0x95   : > { %2087 = vmatpush3.bf16.msra.mxu0 %v2084_v24  ;;  %v2176_v16 = vpack.c.bf16 %v650_v13, %v649_v12  ;;  %v549_v18 = vld [vmem:[#allocation5 + $0x138] sm:$0xff]  ;;  %v651_v19 = vld [vmem:[#allocation5 + $0x1b0] sm:$0xff]  ;;  %v550_v24 = vld [vmem:[#allocation5 + $0x140] sm:$0xff] }
  0x96   : > { %2119 = vmatpush3.bf16.msra.mxu1 %v2116_v25  ;;  %2089 = vmatprep.subr.bf16.mxu0 %v2088_v36  ;;  %v652_v20 = vld [vmem:[#allocation5 + $0x1b8] sm:$0xff]  ;;  %v2148_v22 = vpack.c.bf16 %v549_v18, %v548_v17  ;;  %v551_v25 = vld [vmem:[#allocation5 + $0x148] sm:$0xff]  ;;  %v653_v26 = vld [vmem:[#allocation5 + $0x1c0] sm:$0xff] }
  0x97   : > { %2121 = vmatprep.subr.bf16.mxu1 %v2120_v37  ;;  %v2180_v23 = vpack.c.bf16 %v652_v20, %v651_v19  ;;  %v654_v27 = vld [vmem:[#allocation5 + $0x1c8] sm:$0xff]  ;;  %v2152_v29 = vpack.c.bf16 %v551_v25, %v550_v24  ;;  %v552_v32 = vld [vmem:[#allocation5 + $0x150] sm:$0xff]  ;;  %v553_v33 = vld [vmem:[#allocation5 + $0x158] sm:$0xff] }
  0x98   : > { %v2184_v30 = vpack.c.bf16 %v654_v27, %v653_v26  ;;  %v655_v34 = vld [vmem:[#allocation5 + $0x1d0] sm:$0xff]  ;;  %v656_v35 = vld [vmem:[#allocation5 + $0x1d8] sm:$0xff]  ;;  %v554_v38 = vld [vmem:[#allocation5 + $0x160] sm:$0xff] }
  0x99   : > { %2091 = vmatpush3.bf16.msra.mxu0 %v2088_v36  ;;  %v2156_v36 = vpack.c.bf16 %v553_v33, %v552_v32  ;;  %v555_v39 = vld [vmem:[#allocation5 + $0x168] sm:$0xff]  ;;  %v657_v40 = vld [vmem:[#allocation5 + $0x1e0] sm:$0xff]  ;;  %v659_v46 = vld [vmem:[#allocation5 + $0x1f0] sm:$0xff] }
  0x9a   : > { %2123 = vmatpush3.bf16.msra.mxu1 %v2120_v37  ;;  %2093 = vmatprep.subr.bf16.mxu0 %v2092_v44  ;;  %v2188_v37 = vpack.c.bf16 %v656_v35, %v655_v34  ;;  %v658_v41 = vld [vmem:[#allocation5 + $0x1e8] sm:$0xff]  ;;  %v2160_v42 = vpack.c.bf16 %v555_v39, %v554_v38  ;;  %v660_v47 = vld [vmem:[#allocation5 + $0x1f8] sm:$0xff]  ;;  %v758_v53 = vld [vmem:[#allocation5 + $0x210] sm:$0xff] }
  0x9b   : > { %2125 = vmatprep.subr.bf16.mxu1 %v2124_v45  ;;  %v2192_v43 = vpack.c.bf16 %v658_v41, %v657_v40  ;;  %v2196_v49 = vpack.c.bf16 %v660_v47, %v659_v46  ;;  %v759_v54 = vld [vmem:[#allocation5 + $0x218] sm:$0xff]  ;;  %v760_v59 = vld [vmem:[#allocation5 + $0x220] sm:$0xff]  ;;  %v761_v60 = vld [vmem:[#allocation5 + $0x228] sm:$0xff] }
  0x9c   : > { %v2204_v58 = vpack.c.bf16 %v759_v54, %v758_v53  ;;  %v763_v0 = vld [vmem:[#allocation5 + $0x238] sm:$0xff]  ;;  %v764_v2 = vld [vmem:[#allocation5 + $0x240] sm:$0xff]  ;;  %v765_v3 = vld [vmem:[#allocation5 + $0x248] sm:$0xff] }
  0x9d   : > { %2095 = vmatpush3.bf16.msra.mxu0 %v2092_v44  ;;  %v556_v44 = vld [vmem:[#allocation5 + $0x170] sm:$0xff]  ;;  %v771_v12 = vld [vmem:[#allocation5 + $0x278] sm:$0xff]  ;;  %v981_v17 = vld [vmem:[#allocation8 + $0x80] sm:$0xff] }
  0x9e   : > { %2127 = vmatpush3.bf16.msra.mxu1 %v2124_v45  ;;  %2097 = vmatprep.subr.bf16.mxu0 %v2096_v50  ;;  %v557_v45 = vld [vmem:[#allocation5 + $0x178] sm:$0xff]  ;;  %v770_v11 = vld [vmem:[#allocation5 + $0x270] sm:$0xff]  ;;  %v984_v26 = vld [vmem:[#allocation8 + $0x98] sm:$0xff] }
  0x9f   : > { %2129 = vmatprep.subr.bf16.mxu1 %v2128_v51  ;;  %v2164_v48 = vpack.c.bf16 %v557_v45, %v556_v44  ;;  %v2228_v13 = vpack.c.bf16 %v771_v12, %v770_v11  ;;  %v982_v19 = vld [vmem:[#allocation8 + $0x88] sm:$0xff]  ;;  %v876_v20 = vld [vmem:[#allocation8 + $0x10] sm:$0xff]  ;;  %v878_v27 = vld [vmem:[#allocation8 + $0x20] sm:$0xff] }
  0xa0   : > { %v983_v25 = vld [vmem:[#allocation8 + $0x90] sm:$0xff]  ;;  %v985_v32 = vld [vmem:[#allocation8 + $0xa0] sm:$0xff]  ;;  %v986_v33 = vld [vmem:[#allocation8 + $0xa8] sm:$0xff] }
  0xa1   : > { %2099 = vmatpush3.bf16.msra.mxu0 %v2096_v50  ;;  %v756_v50 = vld [vmem:[#allocation5 + $0x200] sm:$0xff]  ;;  %v2272_v35 = vpack.c.bf16 %v986_v33, %v985_v32  ;;  %v987_v38 = vld [vmem:[#allocation8 + $0xb0] sm:$0xff]  ;;  %v989_v44 = vld [vmem:[#allocation8 + $0xc0] sm:$0xff] }
  0xa2   : > { %2131 = vmatpush3.bf16.msra.mxu1 %v2128_v51  ;;  %2101 = vmatprep.subr.bf16.mxu0 %v2100_v56  ;;  %v757_v51 = vld [vmem:[#allocation5 + $0x208] sm:$0xff]  ;;  %v988_v39 = vld [vmem:[#allocation8 + $0xb8] sm:$0xff]  ;;  %v990_v45 = vld [vmem:[#allocation8 + $0xc8] sm:$0xff] }
  0xa3   : > { %2133 = vmatprep.subr.bf16.mxu1 %v2132_v57  ;;  %v2200_v52 = vpack.c.bf16 %v757_v51, %v756_v50  ;;  %v2276_v41 = vpack.c.bf16 %v988_v39, %v987_v38  ;;  %v2280_v47 = vpack.c.bf16 %v990_v45, %v989_v44  ;;  %v991_v50 = vld [vmem:[#allocation8 + $0xd0] sm:$0xff]  ;;  %v992_v51 = vld [vmem:[#allocation8 + $0xd8] sm:$0xff]  ;;  %v886_v54 = vld [vmem:[#allocation8 + $0x60] sm:$0xff] }
  0xa4   : > { %v2284_v53 = vpack.c.bf16 %v992_v51, %v991_v50 }
  0xa5   : > { %2103 = vmatpush3.bf16.msra.mxu0 %v2100_v56  ;;  %v751_v56 = vrot.slane %v2936_v31, 2 }
  0xa6   : > { %2135 = vmatpush3.bf16.msra.mxu1 %v2132_v57  ;;  %2137 = vmatprep.subr.bf16.mxu0 %v2136_v62  ;;  %v643_v57 = vsel %vm641_vm2, %v640_v6, %v639_v5  ;;  %v766_v5 = vld [vmem:[#allocation5 + $0x250] sm:$0xff]  ;;  %v767_v6 = vld [vmem:[#allocation5 + $0x258] sm:$0xff] }
  0xa7   : > { %2169 = vmatprep.subr.bf16.mxu1 %v2168_v63  ;;  %v753_v61 = vsel %vm752_vm3, %v750_v55, %v751_v56 }
  0xa8   : > { %1755 = vmatmul.mubr.f32.vlgmr.msra.gmra.mrb[0].mxu0 %v323_v4  ;;  %v2216_v4 = vpack.c.bf16 %v765_v3, %v764_v2  ;;  %v1083_v2 = vld [vmem:[#allocation8 + $0x100] sm:$0xff]  ;;  %v1084_v3 = vld [vmem:[#allocation8 + $0x108] sm:$0xff] }
  0xa9   : > { %1790 = vmatmul.mubr.f32.vlgmr.msra.gmra.mrb[0].mxu1 %v433_v7  ;;  %2139 = vmatpush3.bf16.msra.mxu0 %v2136_v62  ;;  %v2208_v62 = vpack.c.bf16 %v761_v60, %v760_v59  ;;  %v2220_v7 = vpack.c.bf16 %v767_v6, %v766_v5  ;;  %v888_v60 = vld [vmem:[#allocation8 + $0x70] sm:$0xff]  ;;  %v2979_v5 = vpack.c.bf16 %v1084_v3, %v1083_v2  ;;  %v1183_v6 = vld [vmem:[#allocation8 + $0x188] sm:$0xff] }
  0xaa   : > { %2171 = vmatpush3.bf16.msra.mxu1 %v2168_v63  ;;  %2141 = vmatprep.subr.bf16.mxu0 %v2140_v8  ;;  %v762_v63 = vld [vmem:[#allocation5 + $0x230] sm:$0xff] }
  0xab   : > { %2173 = vmatprep.subr.bf16.mxu1 %v2172_v9  ;;  %1824 = vmatprep.mubr.f32.mxu0 %v2932_v28  ;;  %v2212_v1 = vpack.c.bf16 %v763_v0, %v762_v63  ;;  %v996_v0 = vld [vmem:[#allocation8 + $0xf8] sm:$0xff] }
  0xac   : > { %1859 = vmatprep.mubr.f32.mxu1 %v642_v14  ;;  %v754_v14 = vsel %vm752_vm3, %v751_v56, %v750_v55  ;;  %v887_v55 = vld [vmem:[#allocation8 + $0x68] sm:$0xff]  ;;  %v993_v56 = vld [vmem:[#allocation8 + $0xe0] sm:$0xff] }
  0xad   : > { %2143 = vmatpush3.bf16.msra.mxu0 %v2140_v8  ;;  %v768_v8 = vld [vmem:[#allocation5 + $0x260] sm:$0xff] }
  0xae   : > { %2175 = vmatpush3.bf16.msra.mxu1 %v2172_v9  ;;  %2145 = vmatprep.subr.bf16.mxu0 %v2144_v15  ;;  %v769_v9 = vld [vmem:[#allocation5 + $0x268] sm:$0xff] }
  0xaf   : > { %2177 = vmatprep.subr.bf16.mxu1 %v2176_v16  ;;  %v2224_v10 = vpack.c.bf16 %v769_v9, %v768_v8  ;;  %v343_v8 = vsub.s32 0, %v2929_v21  ;;  %v319_v9 = vld [vmem:[#allocation7] sm:$0x1f] }
  0xb1   : > { %2147 = vmatpush3.bf16.msra.mxu0 %v2144_v15  ;;  %v874_v15 = vld [vmem:[#allocation8] sm:$0xff]  ;;  %v344_v11 = vrot.slane %v319_v9, %v343_v8 }
  0xb2   : > { %2179 = vmatpush3.bf16.msra.mxu1 %v2176_v16  ;;  %2149 = vmatprep.subr.bf16.mxu0 %v2148_v22  ;;  %v875_v16 = vld [vmem:[#allocation8 + $0x8] sm:$0xff] }
  0xb3   : > { %2181 = vmatprep.subr.bf16.mxu1 %v2180_v23  ;;  %v2232_v18 = vpack.c.bf16 %v875_v16, %v874_v15 }
  0xb5   : > { %2151 = vmatpush3.bf16.msra.mxu0 %v2148_v22  ;;  %v877_v22 = vld [vmem:[#allocation8 + $0x18] sm:$0xff] }
  0xb6   : > { %2183 = vmatpush3.bf16.msra.mxu1 %v2180_v23  ;;  %2153 = vmatprep.subr.bf16.mxu0 %v2152_v29  ;;  %v2264_v23 = vpack.c.bf16 %v982_v19, %v981_v17  ;;  %v2236_v24 = vpack.c.bf16 %v877_v22, %v876_v20 }
  0xb7   : > { %2185 = vmatprep.subr.bf16.mxu1 %v2184_v30 }
  0xb9   : > { %2155 = vmatpush3.bf16.msra.mxu0 %v2152_v29  ;;  %v2268_v29 = vpack.c.bf16 %v984_v26, %v983_v25  ;;  %v560_v26 = vsub.s32 2, %v2929_v21 }
  0xba   : > { %2187 = vmatpush3.bf16.msra.mxu1 %v2184_v30  ;;  %2157 = vmatprep.subr.bf16.mxu0 %v2156_v36  ;;  %v879_v30 = vld [vmem:[#allocation8 + $0x28] sm:$0xff] }
  0xbb   : > { %2189 = vmatprep.subr.bf16.mxu1 %v2188_v37  ;;  %v2240_v34 = vpack.c.bf16 %v879_v30, %v878_v27  ;;  %v663_v27 = vsub.s32 3, %v2929_v21  ;;  %v2992_v30 = vadd.s32 8, %v2929_v21 }
  0xbd   : > { %2159 = vmatpush3.bf16.msra.mxu0 %v2156_v36  ;;  %v880_v36 = vld [vmem:[#allocation8 + $0x30] sm:$0xff]  ;;  %v664_v32 = vrot.slane %v319_v9, %v663_v27  ;;  %vm741_vm6 = vcmp.lt.s32.totalorder %v2992_v30, 15  ;;  %vm852_vm7 = vcmp.lt.s32.totalorder %v2992_v30, 14  ;;  %vm1274_vm12 = vcmp.lt.s32.totalorder %v2992_v30, 13 }
  0xbe   : > { %2191 = vmatpush3.bf16.msra.mxu1 %v2188_v37  ;;  %2161 = vmatprep.subr.bf16.mxu0 %v2160_v42  ;;  %v881_v37 = vld [vmem:[#allocation8 + $0x38] sm:$0xff]  ;;  %v1188_v27 = vld [vmem:[#allocation8 + $0x1b0] sm:$0xff]  ;;  %vm1380_vm13 = vcmp.lt.s32.totalorder %v2992_v30, 10 }
  0xbf   : > { %2193 = vmatprep.subr.bf16.mxu1 %v2192_v43  ;;  %v2244_v40 = vpack.c.bf16 %v881_v37, %v880_v36 }
  0xc1   : > { %2163 = vmatpush3.bf16.msra.mxu0 %v2160_v42  ;;  %v882_v42 = vld [vmem:[#allocation8 + $0x40] sm:$0xff] }
  0xc2   : > { %2195 = vmatpush3.bf16.msra.mxu1 %v2192_v43  ;;  %2165 = vmatprep.subr.bf16.mxu0 %v2164_v48  ;;  %v883_v43 = vld [vmem:[#allocation8 + $0x48] sm:$0xff] }
  0xc3   : > { %2197 = vmatprep.subr.bf16.mxu1 %v2196_v49  ;;  %v2248_v46 = vpack.c.bf16 %v883_v43, %v882_v42 }
  0xc5   : > { %2167 = vmatpush3.bf16.msra.mxu0 %v2164_v48  ;;  %v884_v48 = vld [vmem:[#allocation8 + $0x50] sm:$0xff] }
  0xc6   : > { %2199 = vmatpush3.bf16.msra.mxu1 %v2196_v49  ;;  %2201 = vmatprep.subr.bf16.mxu0 %v2200_v52  ;;  %v885_v49 = vld [vmem:[#allocation8 + $0x58] sm:$0xff] }
  0xc7   : > { %2233 = vmatprep.subr.bf16.mxu1 %v2232_v18 }
  0xc8   : > { %1825 = vmatmul.mubr.f32.vlgmr.msra.gmra.mrb[2].mxu0 %v2936_v31 }
  0xc9   : > { %1860 = vmatmul.mubr.f32.vlgmr.msra.gmra.mrb[2].mxu1 %v643_v57  ;;  %2203 = vmatpush3.bf16.msra.mxu0 %v2200_v52  ;;  %v2252_v52 = vpack.c.bf16 %v885_v49, %v884_v48  ;;  %v2256_v57 = vpack.c.bf16 %v887_v55, %v886_v54  ;;  %v1085_v54 = vld [vmem:[#allocation8 + $0x110] sm:$0xff] }
  0xca   : > { %2205 = vmatprep.subr.bf16.mxu0 %v2204_v58  ;;  %1894 = vmatprep.mubr.f32.mxu0 %v753_v61  ;;  %v889_v61 = vld [vmem:[#allocation8 + $0x78] sm:$0xff] }
  0xcb   : > { %2235 = vmatpush3.bf16.msra.mxu1 %v2232_v18  ;;  %v2260_v63 = vpack.c.bf16 %v889_v61, %v888_v60 }
  0xcc   : > { %2237 = vmatprep.subr.bf16.mxu1 %v2236_v24 }
  0xcd   : > { %2207 = vmatpush3.bf16.msra.mxu0 %v2204_v58  ;;  %v994_v58 = vld [vmem:[#allocation8 + $0xe8] sm:$0xff] }
  0xce   : > { %2209 = vmatprep.subr.bf16.mxu0 %v2208_v62  ;;  %v2288_v59 = vpack.c.bf16 %v994_v58, %v993_v56  ;;  %v1184_v58 = vld [vmem:[#allocation8 + $0x190] sm:$0xff] }
  0xcf   : > { %2239 = vmatpush3.bf16.msra.mxu1 %v2236_v24 }
  0xd0   : > { %2241 = vmatprep.subr.bf16.mxu1 %v2240_v34 }
  0xd1   : > { %2211 = vmatpush3.bf16.msra.mxu0 %v2208_v62  ;;  %v995_v62 = vld [vmem:[#allocation8 + $0xf0] sm:$0xff] }
  0xd2   : > { %2213 = vmatprep.subr.bf16.mxu0 %v2212_v1 }
  0xd3   : > { %2243 = vmatpush3.bf16.msra.mxu1 %v2240_v34 }
  0xd4   : > { %2245 = vmatprep.subr.bf16.mxu1 %v2244_v40 }
  0xd5   : > { %2215 = vmatpush3.bf16.msra.mxu0 %v2212_v1  ;;  %v2292_v1 = vpack.c.bf16 %v996_v0, %v995_v62 }
  0xd6   : > { %2217 = vmatprep.subr.bf16.mxu0 %v2216_v4 }
  0xd7   : > { %2247 = vmatpush3.bf16.msra.mxu1 %v2244_v40 }
  0xd8   : > { %2249 = vmatprep.subr.bf16.mxu1 %v2248_v46 }
  0xd9   : > { %2219 = vmatpush3.bf16.msra.mxu0 %v2216_v4  ;;  %v1182_v4 = vld [vmem:[#allocation8 + $0x180] sm:$0xff] }
  0xda   : > { %2221 = vmatprep.subr.bf16.mxu0 %v2220_v7 }
  0xdb   : > { %2251 = vmatpush3.bf16.msra.mxu1 %v2248_v46  ;;  %v774_v46 = vsub.s32 4, %v2929_v21 }
  0xdc   : > { %2253 = vmatprep.subr.bf16.mxu1 %v2252_v52 }
  0xdd   : > { %2223 = vmatpush3.bf16.msra.mxu0 %v2220_v7  ;;  %v2981_v7 = vpack.c.bf16 %v1183_v6, %v1182_v4 }
  0xde   : > { %2225 = vmatprep.subr.bf16.mxu0 %v2224_v10 }
  0xdf   : > { %2255 = vmatpush3.bf16.msra.mxu1 %v2252_v52 }
  0xe0   : > { %2257 = vmatprep.subr.bf16.mxu1 %v2256_v57 }
  0xe1   : > { %2227 = vmatpush3.bf16.msra.mxu0 %v2224_v10  ;;  %v454_v10 = vsub.s32 1, %v2929_v21 }
  0xe2   : > { %2229 = vmatprep.subr.bf16.mxu0 %v2228_v13 }
  0xe3   : > { %2259 = vmatpush3.bf16.msra.mxu1 %v2256_v57  ;;  %v455_v12 = vrot.slane %v319_v9, %v454_v10  ;;  %v1086_v57 = vld [vmem:[#allocation8 + $0x118] sm:$0xff] }
  0xe4   : > { %2261 = vmatprep.subr.bf16.mxu1 %v2260_v63  ;;  %v2300_v62 = vpack.c.bf16 %v1086_v57, %v1085_v54  ;;  %v1289_v57 = vld [vmem:[#allocation8 + $0x208] sm:$0xff] }
  0xe5   : > { %2231 = vmatpush3.bf16.msra.mxu0 %v2228_v13 }
  0xe6   : > { %2265 = vmatprep.subr.bf16.mxu0 %v2264_v23 }
  0xe7   : > { %2263 = vmatpush3.bf16.msra.mxu1 %v2260_v63 }
  0xe8   : > { %1895 = vmatmul.mubr.f32.vlgmr.msra.gmra.mrb[4].mxu0 %v754_v14  ;;  %2297 = vmatprep.subr.bf16.mxu1 %v2979_v5 }
  0xe9   : > { %2267 = vmatpush3.bf16.msra.mxu0 %v2264_v23 }
  0xea   : > { %2269 = vmatprep.subr.bf16.mxu0 %v2268_v29 }
  0xed   : > { %2271 = vmatpush3.bf16.msra.mxu0 %v2268_v29  ;;  %v561_v29 = vrot.slane %v319_v9, %v560_v26  ;;  %v1090_v26 = vld [vmem:[#allocation8 + $0x138] sm:$0xff] }
  0xee   : > { %2273 = vmatprep.subr.bf16.mxu0 %v2272_v35 }
  0xf1   : > { %2275 = vmatpush3.bf16.msra.mxu0 %v2272_v35 }
  0xf2   : > { %2277 = vmatprep.subr.bf16.mxu0 %v2276_v41 }
  0xf5   : > { %2279 = vmatpush3.bf16.msra.mxu0 %v2276_v41 }
  0xf6   : > { %2281 = vmatprep.subr.bf16.mxu0 %v2280_v47 }
  0xf9   : > { %2283 = vmatpush3.bf16.msra.mxu0 %v2280_v47  ;;  %v775_v47 = vrot.slane %v319_v9, %v774_v46  ;;  %v1194_v46 = vld [vmem:[#allocation8 + $0x1e0] sm:$0xff] }
  0xfa   : > { %2285 = vmatprep.subr.bf16.mxu0 %v2284_v53 }
  0xfd   : > { %2287 = vmatpush3.bf16.msra.mxu0 %v2284_v53  ;;  %v1533_v53 = vld [vmem:[%s3097_s4] ss:$0 sm:$0xff] }
  0xfe   : > { %2289 = vmatprep.subr.bf16.mxu0 %v2288_v59 }
 0x101   : > { %2291 = vmatpush3.bf16.msra.mxu0 %v2288_v59  ;;  %v1185_v59 = vld [vmem:[#allocation8 + $0x198] sm:$0xff] }
 0x102   : > { %2293 = vmatprep.subr.bf16.mxu0 %v2292_v1  ;;  %v2332_v63 = vpack.c.bf16 %v1185_v59, %v1184_v58  ;;  %v1290_v59 = vld [vmem:[#allocation8 + $0x210] sm:$0xff] }
 0x105   : > { %2295 = vmatpush3.bf16.msra.mxu0 %v2292_v1 }
 0x106   : > { %2329 = vmatprep.subr.bf16.mxu0 %v2981_v7 }
 0x17b   : > { %v1756_v13 = vpop.f32.mrb[0].mxu0 }
 0x17c   : > { %v417_v14 = vadd.f32 %v1756_v13, %v344_v11  ;;  %v1791_v15 = vpop.f32.mrb[0].mxu1  ;;  %v411_v16 = vpop.f32.mrb[1].mxu0 }
 0x17d   : > { %v528_v17 = vadd.f32 %v1791_v15, %v455_v12  ;;  %v412_v18 = vadd.f32 %v411_v16, %v344_v11  ;;  %v522_v19 = vpop.f32.mrb[1].mxu1  ;;  %v1088_v16 = vld [vmem:[#allocation8 + $0x128] sm:$0xff] }
 0x17e   : > { %v523_v20 = vadd.f32 %v522_v19, %v455_v12 }
 0x17f   : > { %v540_v22 = vadd.f32 %v528_v17, %v417_v14  ;;  %v426_v23 = vsel %vm420_vm4, %v412_v18, 0.0  ;;  %v1087_v14 = vld [vmem:[#allocation8 + $0x120] sm:$0xff]  ;;  %v1187_v18 = vld [vmem:[#allocation8 + $0x1a8] sm:$0xff] }
 0x180   : > { %v537_v24 = vsel %vm531_vm5, %v523_v20, 0.0  ;;  %v1186_v17 = vld [vmem:[#allocation8 + $0x1a0] sm:$0xff] }
 0x181   : > { %v539_v25 = vadd.f32 %v537_v24, %v426_v23  ;;  %v2304_v23 = vpack.c.bf16 %v1088_v16, %v1087_v14  ;;  %v2336_v24 = vpack.c.bf16 %v1187_v18, %v1186_v17  ;;  %v1303_v16 = vld [vmem:[#allocation8 + $0x278] sm:$0xff] }
 0x19b   : > { %v1826_v33 = vpop.f32.mrb[2].mxu0 }
 0x19c   : > { %v634_v34 = vadd.f32 %v1826_v33, %v561_v29  ;;  %v628_v35 = vpop.f32.mrb[3].mxu0  ;;  %v1861_v36 = vpop.f32.mrb[2].mxu1 }
 0x19d   : > { %v629_v37 = vadd.f32 %v628_v35, %v561_v29  ;;  %v737_v38 = vadd.f32 %v1861_v36, %v664_v32  ;;  %v731_v39 = vpop.f32.mrb[3].mxu1  ;;  %v1189_v29 = vld [vmem:[#allocation8 + $0x1b8] sm:$0xff]  ;;  %v1190_v35 = vld [vmem:[#allocation8 + $0x1c0] sm:$0xff] }
 0x19e   : > { %v638_v40 = vadd.f32 %v634_v34, %v540_v22  ;;  %v732_v41 = vadd.f32 %v731_v39, %v664_v32  ;;  %v2340_v33 = vpack.c.bf16 %v1189_v29, %v1188_v27  ;;  %v1091_v34 = vld [vmem:[#allocation8 + $0x140] sm:$0xff]  ;;  %v1094_v39 = vld [vmem:[#allocation8 + $0x158] sm:$0xff] }
 0x19f   : > { %v637_v42 = vadd.f32 %v629_v37, %v539_v25  ;;  %v747_v43 = vsel %vm741_vm6, %v737_v38, 0.0  ;;  %v1089_v25 = vld [vmem:[#allocation8 + $0x130] sm:$0xff] }
 0x1a0   : > { %v749_v44 = vadd.f32 %v747_v43, %v638_v40  ;;  %v2308_v32 = vpack.c.bf16 %v1090_v26, %v1089_v25  ;;  %v1093_v38 = vld [vmem:[#allocation8 + $0x150] sm:$0xff] }
 0x1a1   : > { %v748_v45 = vadd.f32 %v732_v41, %v637_v42  ;;  %v1192_v40 = vld [vmem:[#allocation8 + $0x1d0] sm:$0xff]  ;;  %v1193_v41 = vld [vmem:[#allocation8 + $0x1d8] sm:$0xff]  ;;  %v2316_v42 = vpack.c.bf16 %v1094_v39, %v1093_v38 }
 0x1a2   : > { %v2348_v43 = vpack.c.bf16 %v1193_v41, %v1192_v40  ;;  %v1534_v38 = vld [vmem:[%s3098_s5] ss:$0 sm:$0xff] }
 0x1bb   : > { %v1896_v48 = vpop.f32.mrb[4].mxu0 }
 0x1bc   : > { %v848_v49 = vadd.f32 %v1896_v48, %v775_v47  ;;  %v842_v50 = vpop.f32.mrb[5].mxu0 }
 0x1bd   : > { %v843_v51 = vadd.f32 %v842_v50, %v775_v47  ;;  %v1195_v47 = vld [vmem:[#allocation8 + $0x1e8] sm:$0xff]  ;;  %v1097_v50 = vld [vmem:[#allocation8 + $0x170] sm:$0xff] }
 0x1be   : > { %v858_v52 = vsel %vm852_vm7, %v848_v49, 0.0  ;;  %v2352_v49 = vpack.c.bf16 %v1195_v47, %v1194_v46 }
 0x1bf   : > { %v860_v55 = vadd.f32 %v858_v52, %v749_v44  ;;  %v859_v56 = vadd.f32 %v843_v51, %v748_v45  ;;  %v1095_v44 = vld [vmem:[#allocation8 + $0x160] sm:$0xff]  ;;  %v1096_v45 = vld [vmem:[#allocation8 + $0x168] sm:$0xff]  ;;  %v1098_v51 = vld [vmem:[#allocation8 + $0x178] sm:$0xff] }
 0x1c0   : > { %v2320_v48 = vpack.c.bf16 %v1096_v45, %v1095_v44  ;;  %v1196_v52 = vld [vmem:[#allocation8 + $0x1f0] sm:$0xff]  ;;  %v2324_v54 = vpack.c.bf16 %v1098_v51, %v1097_v50 }
 0x1c1   : > { %v3000_v60 = vadd.f32 %v1533_v53, %v860_v55  ;;  %v868_v61 = vadd.f32 %v1533_v53, %v859_v56  ;;  %v1197_v53 = vld [vmem:[#allocation8 + $0x1f8] sm:$0xff]  ;;  %v1288_v56 = vld [vmem:[#allocation8 + $0x200] sm:$0xff] }
 0x1c2   : > { %v2356_v55 = vpack.c.bf16 %v1197_v53, %v1196_v52  ;;  %v2360_v58 = vpack.c.bf16 %v1289_v57, %v1288_v56 }
 0x1c3   : > { %v870_v0 = vrot.slane %v868_v61, 2  ;;  %v871_v1 = vrot.slane %v3000_v60, 2  ;;  %v975_v2 = vrot.slane %v868_v61, 5  ;;  %v976_v3 = vrot.slane %v3000_v60, 5 }
 0x1c4   : > { %v1176_v4 = vrot.slane %v868_v61, 3  ;;  %v1177_v6 = vrot.slane %v3000_v60, 3  ;;  %v1283_v8 = vrot.slane %v868_v61, 6  ;;  %v1284_v9 = vrot.slane %v3000_v60, 6 }
 0x1c5   : > { %v873_v10 = vsel %vm752_vm3, %v871_v1, %v870_v0  ;;  %v979_v11 = vsel %vm977_vm8, %v976_v3, %v975_v2  ;;  %v872_v12 = vsel %vm752_vm3, %v870_v0, %v871_v1  ;;  %v978_v13 = vsel %vm977_vm8, %v975_v2, %v976_v3  ;;  %v1293_v0 = vld [vmem:[#allocation8 + $0x228] sm:$0xff]  ;;  %v1294_v2 = vld [vmem:[#allocation8 + $0x230] sm:$0xff]  ;;  %v1295_v3 = vld [vmem:[#allocation8 + $0x238] sm:$0xff] }
 0x1c6   : > { %1929 = vmatprep.mubr.f32.mxu1 %v873_v10  ;;  %1964 = vmatprep.mubr.f32.mxu0 %v979_v11  ;;  %v1179_v15 = vsel %vm1178_vm9, %v1176_v4, %v1177_v6  ;;  %v3016_v19 = vsel %vm1178_vm9, %v1177_v6, %v1176_v4  ;;  %v3020_v20 = vsel %vm322_vm0, %v1283_v8, %v1284_v9  ;;  %v1296_v6 = vld [vmem:[#allocation8 + $0x240] sm:$0xff]  ;;  %v1298_v10 = vld [vmem:[#allocation8 + $0x250] sm:$0xff]  ;;  %v1299_v11 = vld [vmem:[#allocation8 + $0x258] sm:$0xff] }
 0x1c7   : > { %1930 = vmatmul.mubr.f32.vlgmr.msra.gmra.mrb[4].mxu1 %v872_v12  ;;  %1965 = vmatmul.mubr.f32.vlgmr.msra.gmra.mrb[6].mxu0 %v978_v13  ;;  %v3024_v22 = vsel %vm322_vm0, %v1284_v9, %v1283_v8  ;;  %v2372_v4 = vpack.c.bf16 %v1295_v3, %v1294_v2  ;;  %v1297_v8 = vld [vmem:[#allocation8 + $0x248] sm:$0xff]  ;;  %v1300_v12 = vld [vmem:[#allocation8 + $0x260] sm:$0xff] }
 0x1c8   : > { %2299 = vmatpush3.bf16.msra.mxu1 %v2979_v5  ;;  %2331 = vmatpush3.bf16.msra.mxu0 %v2981_v7  ;;  %v1092_v5 = vld [vmem:[#allocation8 + $0x148] sm:$0xff]  ;;  %v2376_v9 = vpack.c.bf16 %v1297_v8, %v1296_v6 }
 0x1c9   : > { %1999 = vmatprep.mubr.f32.mxu1 %v868_v61  ;;  %2034 = vmatprep.mubr.f32.mxu0 %v1179_v15  ;;  %v1191_v7 = vld [vmem:[#allocation8 + $0x1c8] sm:$0xff]  ;;  %v2312_v36 = vpack.c.bf16 %v1092_v5, %v1091_v34  ;;  %v1291_v61 = vld [vmem:[#allocation8 + $0x218] sm:$0xff]  ;;  %v1302_v15 = vld [vmem:[#allocation8 + $0x270] sm:$0xff] }
 0x1ca   : > { %2301 = vmatprep.subr.bf16.mxu1 %v2300_v62  ;;  %2333 = vmatprep.subr.bf16.mxu0 %v2332_v63  ;;  %v2344_v37 = vpack.c.bf16 %v1191_v7, %v1190_v35  ;;  %v1301_v13 = vld [vmem:[#allocation8 + $0x268] sm:$0xff]  ;;  %v2388_v17 = vpack.c.bf16 %v1303_v16, %v1302_v15 }
 0x1cb   : > { %v2384_v14 = vpack.c.bf16 %v1301_v13, %v1300_v12 }
 0x1cc   : > { %2303 = vmatpush3.bf16.msra.mxu1 %v2300_v62  ;;  %2335 = vmatpush3.bf16.msra.mxu0 %v2332_v63  ;;  %v2364_v62 = vpack.c.bf16 %v1291_v61, %v1290_v59  ;;  %v1292_v63 = vld [vmem:[#allocation8 + $0x220] sm:$0xff] }
 0x1cd   : > { %2305 = vmatprep.subr.bf16.mxu1 %v2304_v23  ;;  %2337 = vmatprep.subr.bf16.mxu0 %v2336_v24  ;;  %v2368_v1 = vpack.c.bf16 %v1293_v0, %v1292_v63 }
 0x1d0   : > { %2307 = vmatpush3.bf16.msra.mxu1 %v2304_v23  ;;  %2339 = vmatpush3.bf16.msra.mxu0 %v2336_v24 }
 0x1d1   : > { %2309 = vmatprep.subr.bf16.mxu1 %v2308_v32  ;;  %2341 = vmatprep.subr.bf16.mxu0 %v2340_v33 }
 0x1d4   : > { %2311 = vmatpush3.bf16.msra.mxu1 %v2308_v32  ;;  %2343 = vmatpush3.bf16.msra.mxu0 %v2340_v33 }
 0x1d5   : > { %2313 = vmatprep.subr.bf16.mxu1 %v2312_v36  ;;  %2345 = vmatprep.subr.bf16.mxu0 %v2344_v37 }
 0x1d8   : > { %2315 = vmatpush3.bf16.msra.mxu1 %v2312_v36  ;;  %2347 = vmatpush3.bf16.msra.mxu0 %v2344_v37 }
 0x1d9   : > { %2317 = vmatprep.subr.bf16.mxu1 %v2316_v42  ;;  %2349 = vmatprep.subr.bf16.mxu0 %v2348_v43 }
 0x1dc   : > { %2319 = vmatpush3.bf16.msra.mxu1 %v2316_v42  ;;  %2351 = vmatpush3.bf16.msra.mxu0 %v2348_v43 }
 0x1dd   : > { %2321 = vmatprep.subr.bf16.mxu1 %v2320_v48  ;;  %2353 = vmatprep.subr.bf16.mxu0 %v2352_v49 }
 0x1e0   : > { %2323 = vmatpush3.bf16.msra.mxu1 %v2320_v48  ;;  %2355 = vmatpush3.bf16.msra.mxu0 %v2352_v49 }
 0x1e1   : > { %2325 = vmatprep.subr.bf16.mxu1 %v2324_v54  ;;  %2357 = vmatprep.subr.bf16.mxu0 %v2356_v55 }
 0x1e4   : > { %2327 = vmatpush3.bf16.msra.mxu1 %v2324_v54  ;;  %2359 = vmatpush3.bf16.msra.mxu0 %v2356_v55 }
 0x1e5   : > { %2361 = vmatprep.subr.bf16.mxu1 %v2360_v58 }
 0x1e7   : > { %2000 = vmatmul.mubr.f32.vlgmr.msra.gmra.mrb[6].mxu1 %v3000_v60  ;;  %2035 = vmatmul.mubr.f32.vlgmr.msra.gmra.mrb[8].mxu0 %v3016_v19  ;;  %v2380_v60 = vpack.c.bf16 %v1299_v11, %v1298_v10 }
 0x1e8   : > { %2363 = vmatpush3.bf16.msra.mxu1 %v2360_v58  ;;  %2069 = vmatprep.mubr.f32.mxu1 %v3020_v20 }
 0x1e9   : > { %2365 = vmatprep.subr.bf16.mxu1 %v2364_v62 }
 0x1ec   : > { %2367 = vmatpush3.bf16.msra.mxu1 %v2364_v62 }
 0x1ed   : > { %2369 = vmatprep.subr.bf16.mxu1 %v2368_v1 }
 0x1f0   : > { %2371 = vmatpush3.bf16.msra.mxu1 %v2368_v1 }
 0x1f1   : > { %2373 = vmatprep.subr.bf16.mxu1 %v2372_v4 }
 0x1f4   : > { %2375 = vmatpush3.bf16.msra.mxu1 %v2372_v4 }
 0x1f5   : > { %2377 = vmatprep.subr.bf16.mxu1 %v2376_v9 }
 0x1f8   : > { %2379 = vmatpush3.bf16.msra.mxu1 %v2376_v9 }
 0x1f9   : > { %2381 = vmatprep.subr.bf16.mxu1 %v2380_v60 }
 0x1fc   : > { %2383 = vmatpush3.bf16.msra.mxu1 %v2380_v60 }
 0x1fd   : > { %2385 = vmatprep.subr.bf16.mxu1 %v2384_v14 }
 0x200   : > { %2387 = vmatpush3.bf16.msra.mxu1 %v2384_v14 }
 0x201   : > { %2389 = vmatprep.subr.bf16.mxu1 %v2388_v17 }
 0x204   : > { %2391 = vmatpush3.bf16.msra.mxu1 %v2388_v17 }
 0x207   : > { %2070 = vmatmul.mubr.f32.vlgmr.msra.gmra.mrb[8].mxu1 %v3024_v22 }
 0x29a   : > { %v1931_v18 = vpop.f32.mrb[4].mxu1  ;;  %v1966_v19 = vpop.f32.mrb[6].mxu0 }
 0x29b   : > { %v1081_v20 = vadd.f32 %v1966_v19, %v1931_v18  ;;  %v956_v23 = vpop.f32.mrb[5].mxu1  ;;  %v1063_v24 = vpop.f32.mrb[7].mxu0 }
 0x29c   : > { %v971_v25 = vsel %vm965_vm10, %v956_v23, 0.0  ;;  %v1078_v26 = vsel %vm1072_vm11, %v1063_v24, 0.0 }
 0x29d   : > { %v1080_v27 = vadd.f32 %v1078_v26, %v971_v25 }
 0x2ba   : > { %v2001_v29 = vpop.f32.mrb[6].mxu1  ;;  %v2036_v32 = vpop.f32.mrb[8].mxu0 }
 0x2bb   : > { %v1175_v33 = vadd.f32 %v2001_v29, %v1081_v20  ;;  %v1280_v22 = vsel %vm1274_vm12, %v2036_v32, 0.0  ;;  %v1165_v34 = vpop.f32.mrb[7].mxu1  ;;  %v1264_v5 = vpop.f32.mrb[9].mxu0 }
 0x2bc   : > { %v1174_v35 = vadd.f32 %v1165_v34, %v1080_v27 }
 0x2bd   : > { %v1282_v21 = vadd.f32 %v1280_v22, %v1175_v33 }
 0x2be   : > { %v1281_v7 = vadd.f32 %v1264_v5, %v1174_v35 }
 0x2da   : > { %v2071_v36 = vpop.f32.mrb[8].mxu1 }
 0x2db   : > { %v1386_v37 = vsel %vm1380_vm13, %v2071_v36, 0.0  ;;  %v1370_v39 = vpop.f32.mrb[9].mxu1 }
 0x2dc   : > { %v1388_v40 = vadd.f32 %v1386_v37, %v1282_v21  ;;  %v1387_v41 = vadd.f32 %v1370_v39, %v1281_v7 }
 0x2de   : > { %v1397_v42 = vadd.f32 %v1534_v38, %v1388_v40  ;;  %v1396_v43 = vadd.f32 %v1534_v38, %v1387_v41 }
 0x2e0   : > { %v1399_v30 = vmul.f32 %v1397_v42, %v2936_v31  ;;  %v1398_v44 = vmul.f32 %v1396_v43, %v2932_v28 }
 0x2e2   : > { %1401 = vst [vmem:[%s311_s26 + $0x8] sm:$0xff] %v1399_v30  ;;  %1400 = vst [vmem:[%s311_s26] sm:$0xff] %v1398_v44 }
 0x2e3   : > { %2600 = shalt.err (!%p2597_p4)
}
 0x2e4   : > { %s2601_s27 = scalar_lea.hbm %s3047_s12, 256  ;;  %s2605_s9 = scalar_lea.hbm %s3099_s6, 512 }
 0x2e5   : > { %p2602_p9 = scmp.ne.s32.totalorder %s3047_s12, %s2601_s27  ;;  %p2606_p8 = scmp.lt.u32.totalorder %s3047_s12, %s3099_s6 }
 0x2e6   : > { %p2607_p13 = scmp.lt.u32.totalorder %s2605_s9, %s2601_s27  ;;  %p2609_p10 = scmp.lt.u32.totalorder %s2601_s27, %s3047_s12 }
 0x2e7   : > { %p2603_p0 = pnand %p2602_p9, %p2858_p5 }
 0x2e8   : > { %p2608_p6 = por %p2607_p13, %p2606_p8 }
 0x2e9   : > { %p2604_p11 = pneg %p2603_p0 }
 0x2ea   : > { %p2610_p3 = por %p2609_p10, %p2608_p6 }
 0x2ec   : > { %p2611_p7 = pnand %p2610_p3, %p2604_p11 }
 0x2ee   : > { %2614 = shalt.err (!%p2611_p7)
}
 0x2ef   : > { %s2670_s16 = smov 128   ;;  %s2671_s17 = smov 8  }
 0x2f0   : > { %2406 = dma.vmem_to_hbm [thread:$0]  (%p2858_p5), %s3042_s10, 256, %s3047_s12, %s1403_s20, %s2670_s16, %s2670_s16, %s2671_s17  }
 0x2f1 PF: > { %s1431_s25 = sand.u32 1, %s2649_s21   ;;  %p3117_p12 = scmp.ne.s32.totalorder %s3104_s28, 0 }
 0x2f2   : > { %p3118_p1 = scmp.ge.s32.totalorder %s2661_s24, 2  ;;  %s1432_s19 = scalar_lea.sflag [#allocation4], %s1431_s25 }
 0x2f4   : > { %p2423_p2 = pnand %p3118_p1, %p3117_p12 }
 0x2f6   : > { %2644 = dma.done.wait (!%p2423_p2), %s1432_s19, 256  }
 0x2f7   : > { %2646 = vsyncadd (!%p2423_p2), %s1432_s19, 4294967040  ;;  %p21_p4 = scmp.ge.s32.totalorder %s2844_s18, 4   ;;  %s3119_s21 = smov %s2653_s22 }
 0x2f8   : > { %s3120_s22 = smov %s2657_s23  ;;  %s3121_s23 = smov %s2854_s14 }
 0x2f9   : > { %s3122_s24 = smov %s2844_s18  ;;  %23 = sbr.rel (!%p21_p4) target bundleno = 7 (0x7), region = 109 }
 0x300   :  { %1437 = vsyncpa [#allocation3], 1 }
 0x301   :  { %1439 = vsyncpa [#allocation3 + $0x1], 1 }
 0x302   :  { %1440 = vsyncpa [#allocation6], 1 }
 0x303   :  { %1441 = vsyncpa [#allocation9], 1 }
 0x304   :  { %1442 = vsyncpa [#allocation4], 1 }
 0x305   :  { %1444 = vsyncpa [#allocation4 + $0x1], 1 }

</bundles_post_ra>
